<compile_context>
chip_gen: v5e
topology: v5e:2x2
jax: 0.10.0
libtpu: 0.0.40
codegen_flags: <defaults>
</compile_context>

<pallas_src>
import functools

import jax
import jax.numpy as jnp
from jax.experimental import pallas as pl
from jax.experimental.pallas import tpu as pltpu


def _dense_mlp_kernel(x_ref, w1_ref, b1_ref, w3_ref, b3_ref, w2_ref, b2_ref,
                      o_ref, acc_ref):
    """Grid = (token_tiles, inter_chunks); inter chunk axis is the reduction."""
    k = pl.program_id(1)

    # Init accumulator with the down-proj bias (folded in once, at k == 0).
    @pl.when(k == 0)
    def _():
        acc_ref[...] = jnp.broadcast_to(
            b2_ref[...].astype(jnp.float32), acc_ref.shape)

    x = x_ref[...]                                     # (tm, dim) bf16

    # gate proj + up proj for this inter_dim chunk (f32 accumulation on MXU)
    h1 = jnp.dot(x, w1_ref[...], preferred_element_type=jnp.float32)
    h1 = h1 + b1_ref[...].astype(jnp.float32)
    h3 = jnp.dot(x, w3_ref[...], preferred_element_type=jnp.float32)
    h3 = h3 + b3_ref[...].astype(jnp.float32)

    # silu(h1) * h3  (sigmoid lands on the EUP slot; effectively free under MXU)
    g = (h1 * jax.nn.sigmoid(h1)) * h3
    g = g.astype(x.dtype)                              # bf16 for the MXU

    # partial down-proj, accumulated across inter_dim chunks
    acc_ref[...] += jnp.dot(g, w2_ref[...], preferred_element_type=jnp.float32)

    # Finalize: cast and write the output tile on the last reduction step.
    @pl.when(k == pl.num_programs(1) - 1)
    def _():
        o_ref[...] = acc_ref[...].astype(o_ref.dtype)


def _vmem_budget_bytes(tm, tn, dim):
    """Rough per-call VMEM footprint (double-buffered tiles + f32 accumulator)."""
    bf16 = 2
    x_tile = tm * dim * bf16 * 2                  # x tile, double-buffered
    o_tile = tm * dim * bf16 * 2                  # output tile
    w_tiles = (2 * dim * tn + tn * dim) * bf16 * 2  # w1,w3 (dim,tn) + w2 (tn,dim)
    b_tiles = (2 * tn + dim) * bf16 * 2
    acc = tm * dim * 4                            # f32 scratch
    est = x_tile + o_tile + w_tiles + b_tiles + acc
    # generous headroom, but never ask for more than ~100 MiB (v6e) — shrink
    # tm/tn instead on v7x (64 MiB physical) / v5e (16 MiB default scoped).
    return max(32 << 20, min(int(est * 1.5) + (4 << 20), 100 << 20))


def dense_mlp(x, w1, b1, w3, b3, w2, b2, *, tm=256, tn=512):
    """x: [tokens, dim] bf16.  Weights stored [in, out], biases [1, out].

    Recommended tiles: v6e/v7x tm=256, v6e tn=512-1024, v7x tn=256,
    v5e tm=128, tn=256 (128-aligned, smaller scoped VMEM).
    """
    tokens, dim = x.shape
    inter_dim = w1.shape[1]

    tm = min(tm, tokens)
    tn = min(tn, inter_dim)
    assert tokens % tm == 0, "tokens must be a multiple of tm"
    assert inter_dim % tn == 0, "inter_dim must be a multiple of tn"

    grid = (tokens // tm, inter_dim // tn)   # reduction (inter chunks) innermost

    cost = pl.CostEstimate(
        flops=6 * tokens * dim * inter_dim,          # three matmuls
        transcendentals=tokens * inter_dim,          # sigmoid
        bytes_accessed=(2 * tokens * dim             # x read + out write
                        + 3 * dim * inter_dim        # w1, w3, w2
                        + 2 * inter_dim + dim) * 2,  # biases (bf16)
    )

    return pl.pallas_call(
        _dense_mlp_kernel,
        out_shape=jax.ShapeDtypeStruct((tokens, dim), x.dtype),
        grid_spec=pltpu.PrefetchScalarGridSpec(
            num_scalar_prefetch=0,
            grid=grid,
            in_specs=[
                # x tile: revisited across the reduction axis (same block index)
                pl.BlockSpec((tm, dim), lambda i, k: (i, 0)),
                # streamed weight / bias chunks along inter_dim
                pl.BlockSpec((dim, tn), lambda i, k: (0, k)),   # w1 chunk
                pl.BlockSpec((1, tn), lambda i, k: (0, k)),     # b1 chunk
                pl.BlockSpec((dim, tn), lambda i, k: (0, k)),   # w3 chunk
                pl.BlockSpec((1, tn), lambda i, k: (0, k)),     # b3 chunk
                pl.BlockSpec((tn, dim), lambda i, k: (k, 0)),   # w2 chunk
                pl.BlockSpec((1, dim), lambda i, k: (0, 0)),    # b2 (resident)
            ],
            # output tile is resident across the reduction axis (accumulator)
            out_specs=pl.BlockSpec((tm, dim), lambda i, k: (i, 0)),
            scratch_shapes=[pltpu.VMEM((tm, dim), jnp.float32)],
        ),
        compiler_params=pltpu.CompilerParams(
            dimension_semantics=("parallel", "arbitrary"),
            vmem_limit_bytes=_vmem_budget_bytes(tm, tn, dim),
        ),
        cost_estimate=cost,
    )(x, w1, b1, w3, b3, w2, b2)


def init_params(key, dim, inter_dim):
    """Deterministic synthetic parameters (same shapes as the PyTorch module).

    nn.Linear(dim, inter_dim) has weight (inter_dim, dim) and bias (inter_dim,);
    we store the transpose [in, out] and biases as [1, out] for lane alignment.
    """
    k1, k2, k3, k4, k5, k6 = jax.random.split(key, 6)
    s1 = 1.0 / jnp.sqrt(dim)
    s2 = 1.0 / jnp.sqrt(inter_dim)
    w1 = jax.random.uniform(k1, (dim, inter_dim), jnp.float32, -s1, s1
                            ).astype(jnp.bfloat16)
    b1 = jax.random.uniform(k2, (1, inter_dim), jnp.float32, -s1, s1
                            ).astype(jnp.bfloat16)
    w3 = jax.random.uniform(k3, (dim, inter_dim), jnp.float32, -s1, s1
                            ).astype(jnp.bfloat16)
    b3 = jax.random.uniform(k4, (1, inter_dim), jnp.float32, -s1, s1
                            ).astype(jnp.bfloat16)
    w2 = jax.random.uniform(k5, (inter_dim, dim), jnp.float32, -s2, s2
                            ).astype(jnp.bfloat16)
    b2 = jax.random.uniform(k6, (1, dim), jnp.float32, -s2, s2
                            ).astype(jnp.bfloat16)
    return w1, b1, w3, b3, w2, b2


def reference_mlp(x, w1, b1, w3, b3, w2, b2):
    """Pure-JAX reference mimicking the PyTorch forward (bf16 linears)."""
    h1 = (jnp.dot(x, w1, preferred_element_type=jnp.float32)
          + b1.astype(jnp.float32))
    h3 = (jnp.dot(x, w3, preferred_element_type=jnp.float32)
          + b3.astype(jnp.float32))
    g = (jax.nn.silu(h1) * h3).astype(jnp.bfloat16)
    out = (jnp.dot(g, w2, preferred_element_type=jnp.float32)
           + b2.astype(jnp.float32))
    return out.astype(jnp.bfloat16)


if __name__ == "__main__":
    # Small but lane-dense shapes (multiples of 128 to avoid masked partial
    # stores): batch=2, seq=64, dim=128, inter_dim=256.
    batch, seq, dim, inter_dim = 2, 64, 128, 256
    tokens = batch * seq

    key = jax.random.PRNGKey(0)
    kx, kp = jax.random.split(key)
    x = jax.random.normal(kx, (tokens, dim), jnp.float32).astype(jnp.bfloat16)
    params = init_params(kp, dim, inter_dim)

    # tm/tn clamp down to the toy sizes here; at real DeepSeek-V3 dense shapes
    # (dim=7168, inter_dim=18432) the same call streams 3 weight chunks per
    # reduction step and stays within VMEM on v5e/v6e/v7x.
    y = dense_mlp(x, *params, tm=256, tn=512)
    y = jax.block_until_ready(y)

    # correctness check against pure-JAX reference
    y_ref = reference_mlp(x, *params)
    err = jnp.max(jnp.abs(y.astype(jnp.float32) - y_ref.astype(jnp.float32)))
    assert y.shape == (tokens, dim) and y.dtype == jnp.bfloat16
    assert float(err) < 1e-1, f"mismatch vs reference: {float(err)}"

    print("KERNEL_OK")
</pallas_src>

<mosaic_0001>
module attributes {stable_mosaic.version = 11 : i64} {
  func.func @_dense_mlp_kernel(%arg0: i32, %arg1: i32, %arg2: memref<128x128xbf16, #tpu.memory_space<vmem>>, %arg3: memref<128x256xbf16, #tpu.memory_space<vmem>>, %arg4: memref<1x256xbf16, #tpu.memory_space<vmem>>, %arg5: memref<128x256xbf16, #tpu.memory_space<vmem>>, %arg6: memref<1x256xbf16, #tpu.memory_space<vmem>>, %arg7: memref<256x128xbf16, #tpu.memory_space<vmem>>, %arg8: memref<1x128xbf16, #tpu.memory_space<vmem>>, %arg9: memref<128x128xbf16, #tpu.memory_space<vmem>>, %arg10: memref<128x128xf32, #tpu.memory_space<vmem>>) attributes {dimension_semantics = [#tpu.dimension_semantics<parallel>, #tpu.dimension_semantics<arbitrary>], iteration_bounds = array<i64: 1, 1>, scalar_prefetch = 0 : i64, scratch_operands = 1 : i64, tpu.core_type = #tpu.core_type<tc>, window_params = [{transform_indices = @transform_0, window_bounds = array<i64: 128, 128>}, {transform_indices = @transform_1, window_bounds = array<i64: 128, 256>}, {transform_indices = @transform_2, window_bounds = array<i64: 1, 256>}, {transform_indices = @transform_3, window_bounds = array<i64: 128, 256>}, {transform_indices = @transform_4, window_bounds = array<i64: 1, 256>}, {transform_indices = @transform_5, window_bounds = array<i64: 256, 128>}, {pipeline_mode = #tpu.pipeline_mode<synchronous>, transform_indices = @transform_6, window_bounds = array<i64: 1, 128>}, {transform_indices = @transform_7, window_bounds = array<i64: 128, 128>}]} {
    %c0_i32 = arith.constant 0 : i32
    %0 = arith.cmpi eq, %arg1, %c0_i32 : i32
    %1 = arith.extui %0 : i1 to i32
    %c0_i32_0 = arith.constant 0 : i32
    %2 = arith.cmpi ne, %1, %c0_i32_0 : i32
    scf.if %2 {
      %c0_21 = arith.constant 0 : index
      %c0_22 = arith.constant 0 : index
      %32 = vector.load %arg8[%c0_21, %c0_22] : memref<1x128xbf16, #tpu.memory_space<vmem>>, vector<1x128xbf16>
      %33 = arith.extf %32 : vector<1x128xbf16> to vector<1x128xf32>
      %34 = vector.shape_cast %33 : vector<1x128xf32> to vector<1x128xf32>
      %35 = vector.broadcast %34 : vector<1x128xf32> to vector<128x128xf32>
      %c0_23 = arith.constant 0 : index
      %c0_24 = arith.constant 0 : index
      %36 = vector.load %arg10[%c0_23, %c0_24] : memref<128x128xf32, #tpu.memory_space<vmem>>, vector<128x128xf32>
      tpu.vector_store %arg10[%c0_23, %c0_24], %35 {strides = array<i32>} : memref<128x128xf32, #tpu.memory_space<vmem>>, vector<128x128xf32>,
    } else {
    }
    %c0 = arith.constant 0 : index
    %c0_1 = arith.constant 0 : index
    %3 = vector.load %arg2[%c0, %c0_1] : memref<128x128xbf16, #tpu.memory_space<vmem>>, vector<128x128xbf16>
    %c0_2 = arith.constant 0 : index
    %c0_3 = arith.constant 0 : index
    %4 = vector.load %arg3[%c0_2, %c0_3] : memref<128x256xbf16, #tpu.memory_space<vmem>>, vector<128x256xbf16>
    %cst = arith.constant dense<0.000000e+00> : vector<128x256xf32>
    %5 = tpu.matmul %3, %4, %cst {dimension_numbers = #tpu.dot_dimension_numbers<[1], [0], [0], [1], [0, 0, 1, 1], [], []>} : vector<128x128xbf16>, vector<128x256xbf16>, vector<128x256xf32> -> vector<128x256xf32>
    %c0_4 = arith.constant 0 : index
    %c0_5 = arith.constant 0 : index
    %6 = vector.load %arg4[%c0_4, %c0_5] : memref<1x256xbf16, #tpu.memory_space<vmem>>, vector<1x256xbf16>
    %7 = arith.extf %6 : vector<1x256xbf16> to vector<1x256xf32>
    %8 = vector.broadcast %7 : vector<1x256xf32> to vector<128x256xf32>
    %9 = arith.addf %5, %8 : vector<128x256xf32>
    %c0_6 = arith.constant 0 : index
    %c0_7 = arith.constant 0 : index
    %10 = vector.load %arg5[%c0_6, %c0_7] : memref<128x256xbf16, #tpu.memory_space<vmem>>, vector<128x256xbf16>
    %cst_8 = arith.constant dense<0.000000e+00> : vector<128x256xf32>
    %11 = tpu.matmul %3, %10, %cst_8 {dimension_numbers = #tpu.dot_dimension_numbers<[1], [0], [0], [1], [0, 0, 1, 1], [], []>} : vector<128x128xbf16>, vector<128x256xbf16>, vector<128x256xf32> -> vector<128x256xf32>
    %c0_9 = arith.constant 0 : index
    %c0_10 = arith.constant 0 : index
    %12 = vector.load %arg6[%c0_9, %c0_10] : memref<1x256xbf16, #tpu.memory_space<vmem>>, vector<1x256xbf16>
    %13 = arith.extf %12 : vector<1x256xbf16> to vector<1x256xf32>
    %14 = vector.broadcast %13 : vector<1x256xf32> to vector<128x256xf32>
    %15 = arith.addf %11, %14 : vector<128x256xf32>
    %16 = arith.negf %9 : vector<128x256xf32>
    %17 = math.exp %16 : vector<128x256xf32>
    %cst_11 = arith.constant 1.000000e+00 : f32
    %18 = vector.broadcast %cst_11 : f32 to vector<128x256xf32>
    %19 = arith.addf %18, %17 : vector<128x256xf32>
    %20 = arith.divf %18, %19 : vector<128x256xf32>
    %21 = arith.mulf %9, %20 : vector<128x256xf32>
    %22 = arith.mulf %21, %15 : vector<128x256xf32>
    %23 = arith.truncf %22 : vector<128x256xf32> to vector<128x256xbf16>
    %c0_12 = arith.constant 0 : index
    %c0_13 = arith.constant 0 : index
    %24 = vector.load %arg10[%c0_12, %c0_13] : memref<128x128xf32, #tpu.memory_space<vmem>>, vector<128x128xf32>
    %c0_14 = arith.constant 0 : index
    %c0_15 = arith.constant 0 : index
    %25 = vector.load %arg7[%c0_14, %c0_15] : memref<256x128xbf16, #tpu.memory_space<vmem>>, vector<256x128xbf16>
    %cst_16 = arith.constant dense<0.000000e+00> : vector<128x128xf32>
    %26 = tpu.matmul %23, %25, %cst_16 {dimension_numbers = #tpu.dot_dimension_numbers<[1], [0], [0], [1], [0, 0, 1, 1], [], []>} : vector<128x256xbf16>, vector<256x128xbf16>, vector<128x128xf32> -> vector<128x128xf32>
    %27 = arith.addf %24, %26 : vector<128x128xf32>
    %c0_17 = arith.constant 0 : index
    %c0_18 = arith.constant 0 : index
    %28 = vector.load %arg10[%c0_17, %c0_18] : memref<128x128xf32, #tpu.memory_space<vmem>>, vector<128x128xf32>
    tpu.vector_store %arg10[%c0_17, %c0_18], %27 {strides = array<i32>} : memref<128x128xf32, #tpu.memory_space<vmem>>, vector<128x128xf32>,
    %c0_i32_19 = arith.constant 0 : i32
    %29 = arith.cmpi eq, %arg1, %c0_i32_19 : i32
    %30 = arith.extui %29 : i1 to i32
    %c0_i32_20 = arith.constant 0 : i32
    %31 = arith.cmpi ne, %30, %c0_i32_20 : i32
    scf.if %31 {
      %c0_21 = arith.constant 0 : index
      %c0_22 = arith.constant 0 : index
      %32 = vector.load %arg10[%c0_21, %c0_22] : memref<128x128xf32, #tpu.memory_space<vmem>>, vector<128x128xf32>
      %33 = arith.truncf %32 : vector<128x128xf32> to vector<128x128xbf16>
      %c0_23 = arith.constant 0 : index
      %c0_24 = arith.constant 0 : index
      %34 = vector.load %arg9[%c0_23, %c0_24] : memref<128x128xbf16, #tpu.memory_space<vmem>>, vector<128x128xbf16>
      tpu.vector_store %arg9[%c0_23, %c0_24], %33 {strides = array<i32>} : memref<128x128xbf16, #tpu.memory_space<vmem>>, vector<128x128xbf16>,
    } else {
    }
    return
  }
  func.func @transform_0(%arg0: i32, %arg1: i32) -> (i32, i32) {
    %c0_i32 = arith.constant 0 : i32
    %c0_i32_0 = arith.constant 0 : i32
    return %arg0, %c0_i32 : i32, i32
  }
  func.func @transform_1(%arg0: i32, %arg1: i32) -> (i32, i32) {
    %c0_i32 = arith.constant 0 : i32
    %c0_i32_0 = arith.constant 0 : i32
    return %c0_i32, %arg1 : i32, i32
  }
  func.func @transform_2(%arg0: i32, %arg1: i32) -> (i32, i32) {
    %c0_i32 = arith.constant 0 : i32
    %c0_i32_0 = arith.constant 0 : i32
    return %c0_i32, %arg1 : i32, i32
  }
  func.func @transform_3(%arg0: i32, %arg1: i32) -> (i32, i32) {
    %c0_i32 = arith.constant 0 : i32
    %c0_i32_0 = arith.constant 0 : i32
    return %c0_i32, %arg1 : i32, i32
  }
  func.func @transform_4(%arg0: i32, %arg1: i32) -> (i32, i32) {
    %c0_i32 = arith.constant 0 : i32
    %c0_i32_0 = arith.constant 0 : i32
    return %c0_i32, %arg1 : i32, i32
  }
  func.func @transform_5(%arg0: i32, %arg1: i32) -> (i32, i32) {
    %c0_i32 = arith.constant 0 : i32
    %c0_i32_0 = arith.constant 0 : i32
    return %arg1, %c0_i32 : i32, i32
  }
  func.func @transform_6(%arg0: i32, %arg1: i32) -> (i32, i32) {
    %c0_i32 = arith.constant 0 : i32
    %c0_i32_0 = arith.constant 0 : i32
    %c0_i32_1 = arith.constant 0 : i32
    return %c0_i32, %c0_i32_0 : i32, i32
  }
  func.func @transform_7(%arg0: i32, %arg1: i32) -> (i32, i32) {
    %c0_i32 = arith.constant 0 : i32
    %c0_i32_0 = arith.constant 0 : i32
    return %arg0, %c0_i32 : i32, i32
  }
}

</mosaic_0001>

<bundles_post_ra>
// kernel: tpu_custom_call.1
= control target key start
LH: loop header
LB: loop body
LE: loop exit
PB: predicated region body
PF: predicated region fallthrough
CT: control target
= control target key end

     0   :  { %12 = vsyncpa [#allocation4], 0  ;;  %s3686_s0 = inlined_call_operand.hbm [shape: bf16[128,128], index: 0, kind: input, shape index: {}]   ;;  %s3687_s1 = inlined_call_operand.hbm [shape: bf16[128,256], index: 1, kind: input, shape index: {}]   ;;  %s3688_s2 = inlined_call_operand.hbm [shape: bf16[1,256], index: 2, kind: input, shape index: {}]   ;;  %s3689_s3 = inlined_call_operand.hbm [shape: bf16[128,256], index: 3, kind: input, shape index: {}]   ;;  %s3690_s4 = inlined_call_operand.vmem [shape: bf16[1,256], index: 4, kind: input, shape index: {}]   ;;  %s3691_s5 = inlined_call_operand.hbm [shape: bf16[256,128], index: 5, kind: input, shape index: {}]   ;;  %s3692_s6 = inlined_call_operand.vmem [shape: bf16[1,128], index: 6, kind: input, shape index: {}]   ;;  %s3693_s7 = inlined_call_operand.hbm [shape: bf16[128,128], index: 7, kind: output, shape index: {}]  }
   0x1   :  { %13 = vsyncpa [#allocation7], 0 }
   0x2   :  { %14 = vsyncpa [#allocation10], 0  ;;  %s33_s26 = sshll.u32 %s3687_s1, 4  ;;  %s34_s26 = int_to_ptr.hbm [resolvable:$true] %s33_s26 }
   0x3   :  { %15 = vsyncpa [#allocation5], 0  ;;  %s2295_s27 = smov [#allocation6]   ;;  %s57_s8 = sshll.u32 %s3689_s3, 4  ;;  %s58_s8 = int_to_ptr.hbm [resolvable:$true] %s57_s8 }
   0x4   :  { %s35_s28 = sshll.u32 %s2295_s27, 4  ;;  %s2296_s9 = smov 128   ;;  %s36_s28 = int_to_ptr.vmem [resolvable:$true] %s35_s28 }
   0x5   :  { %s2297_s10 = smov 8   ;;  %s2298_s11 = smov [#allocation9]  }
   0x6   :  { %41 = dma.hbm_to_vmem [thread:$0]  %s34_s26, 2048, %s36_s28, [#allocation7], %s2296_s9, %s2296_s9, %s2297_s10  }
   0x7   :  { %s59_s12 = sshll.u32 %s2298_s11, 4  ;;  %s20_s15 = sshll.u32 %s3686_s0, 4  ;;  %s60_s12 = int_to_ptr.vmem [resolvable:$true] %s59_s12  ;;  %s21_s15 = int_to_ptr.hbm [resolvable:$true] %s20_s15 }
   0x8   :  { %65 = dma.hbm_to_vmem [thread:$0]  %s58_s8, 2048, %s60_s12, [#allocation10], %s2296_s9, %s2296_s9, %s2297_s10  }
   0x9   :  { %s2299_s1 = smov [#allocation3]   ;;  %s47_s3 = sshll.u32 %s3688_s2, 4  ;;  %s48_s3 = int_to_ptr.hbm [resolvable:$true] %s47_s3 }
   0xa   :  { %s22_s16 = sshll.u32 %s2299_s1, 4  ;;  %s2300_s19 = smov 64   ;;  %s23_s16 = int_to_ptr.vmem [resolvable:$true] %s22_s16 }
   0xb   :  { %s2301_s20 = smov 4   ;;  %s2302_s21 = smov [#allocation8]  }
   0xc   :  { %28 = dma.hbm_to_vmem [thread:$0]  %s21_s15, 1024, %s23_s16, [#allocation4], %s2300_s19, %s2300_s19, %s2301_s20  }
   0xd   :  { %s49_s22 = sshll.u32 %s2302_s21, 4  ;;  %s72_s24 = sshll.u32 %s3691_s5, 4  ;;  %s50_s22 = int_to_ptr.vmem [resolvable:$true] %s49_s22  ;;  %s73_s24 = int_to_ptr.hbm [resolvable:$true] %s72_s24 }
   0xe   :  { %52 = dma.hbm_to_vmem [thread:$0]  %s48_s3, 32, %s50_s22, [#allocation7]  }
   0xf   :  { %s2303_s25 = smov [#allocation11]  }
  0x10   :  { %s74_s26 = sshll.u32 %s2303_s25, 4  ;;  %s75_s26 = int_to_ptr.vmem [resolvable:$true] %s74_s26 }
  0x11   :  { %80 = dma.hbm_to_vmem [thread:$0]  %s73_s24, 2048, %s75_s26, [#allocation10], %s2300_s19, %s2300_s19, %s2301_s20  }
  0x12   :  { %2287 = dma.done.wait [#allocation4], 1024  }
  0x13   :  { %2288 = vsyncadd [#allocation4], 4294966272 }
  0x14   :  { %2289 = dma.done.wait [#allocation7], 2080  }
  0x15   :  { %2290 = vsyncadd [#allocation7], 4294965216 }
  0x16   :  { %2291 = dma.done.wait [#allocation10], 4096  }
  0x17   :  { %2292 = vsyncadd [#allocation10], 4294963200  ;;  %v1720_v0 = vld [vmem:[#allocation6 + $0x70] sm:$0xf]  ;;  %v1909_v1 = vld [vmem:[#allocation6 + $0x74] sm:$0xf0] }
  0x18   :  { %v1908_v2 = vld [vmem:[#allocation6 + $0x74] sm:$0xf]  ;;  %v1721_v3 = vor.u32 %v1909_v1, %v1720_v0  ;;  %v1722_v4 = vld [vmem:[#allocation6 + $0x78] sm:$0xf0]  ;;  %v1712_v5 = vld [vmem:[#allocation6 + $0x60] sm:$0xf] }
  0x19   :  { %v1907_v6 = vld [vmem:[#allocation6 + $0x64] sm:$0xf0]  ;;  %v1725_v7 = vor.u32 %v1908_v2, %v1722_v4  ;;  %v1906_v8 = vld [vmem:[#allocation6 + $0x64] sm:$0xf]  ;;  %v1714_v9 = vld [vmem:[#allocation6 + $0x68] sm:$0xf0] }
  0x1a   :  { %1989 = vmatpush.bf16.msra.mxu2 %v1721_v3  ;;  %295 = vmatpush.bf16.msra.mxu0 %v1721_v3  ;;  %v1713_v10 = vor.u32 %v1907_v6, %v1712_v5  ;;  %v1717_v11 = vor.u32 %v1906_v8, %v1714_v9  ;;  %v1704_v12 = vld [vmem:[#allocation6 + $0x50] sm:$0xf]  ;;  %v1905_v13 = vld [vmem:[#allocation6 + $0x54] sm:$0xf0]  ;;  %v1904_v14 = vld [vmem:[#allocation6 + $0x54] sm:$0xf] }
  0x1b   :  { %1997 = vmatpush.bf16.msra.mxu3 %v1725_v7  ;;  %344 = vmatpush.bf16.msra.mxu1 %v1725_v7  ;;  %v1706_v15 = vld [vmem:[#allocation6 + $0x58] sm:$0xf0]  ;;  %v1705_v16 = vor.u32 %v1905_v13, %v1704_v12  ;;  %v1696_v18 = vld [vmem:[#allocation6 + $0x40] sm:$0xf]  ;;  %v1903_v19 = vld [vmem:[#allocation6 + $0x44] sm:$0xf0] }
  0x1c   :  { %v1709_v17 = vor.u32 %v1904_v14, %v1706_v15  ;;  %v1902_v20 = vld [vmem:[#allocation6 + $0x44] sm:$0xf]  ;;  %v1698_v21 = vld [vmem:[#allocation6 + $0x48] sm:$0xf0]  ;;  %v1697_v22 = vor.u32 %v1903_v19, %v1696_v18  ;;  %v1688_v24 = vld [vmem:[#allocation6 + $0x30] sm:$0xf] }
  0x1d   :  { %v1701_v23 = vor.u32 %v1902_v20, %v1698_v21  ;;  %v1901_v25 = vld [vmem:[#allocation6 + $0x34] sm:$0xf0]  ;;  %v1900_v26 = vld [vmem:[#allocation6 + $0x34] sm:$0xf]  ;;  %v1690_v27 = vld [vmem:[#allocation6 + $0x38] sm:$0xf0] }
  0x1e   :  { %1990 = vmatpush.bf16.msra.mxu2 %v1713_v10  ;;  %296 = vmatpush.bf16.msra.mxu0 %v1713_v10  ;;  %v1689_v28 = vor.u32 %v1901_v25, %v1688_v24  ;;  %v1693_v29 = vor.u32 %v1900_v26, %v1690_v27  ;;  %v1680_v30 = vld [vmem:[#allocation6 + $0x20] sm:$0xf]  ;;  %v1899_v31 = vld [vmem:[#allocation6 + $0x24] sm:$0xf0]  ;;  %v1898_v32 = vld [vmem:[#allocation6 + $0x24] sm:$0xf] }
  0x1f   :  { %1998 = vmatpush.bf16.msra.mxu3 %v1717_v11  ;;  %345 = vmatpush.bf16.msra.mxu1 %v1717_v11  ;;  %v1682_v33 = vld [vmem:[#allocation6 + $0x28] sm:$0xf0]  ;;  %v1681_v34 = vor.u32 %v1899_v31, %v1680_v30  ;;  %v1672_v36 = vld [vmem:[#allocation6 + $0x10] sm:$0xf]  ;;  %v1897_v37 = vld [vmem:[#allocation6 + $0x14] sm:$0xf0] }
  0x20   :  { %v1685_v35 = vor.u32 %v1898_v32, %v1682_v33  ;;  %v1896_v38 = vld [vmem:[#allocation6 + $0x14] sm:$0xf]  ;;  %v1674_v39 = vld [vmem:[#allocation6 + $0x18] sm:$0xf0]  ;;  %v1673_v40 = vor.u32 %v1897_v37, %v1672_v36  ;;  %v1664_v42 = vld [vmem:[#allocation6] sm:$0xf] }
  0x21   :  { %v1677_v41 = vor.u32 %v1896_v38, %v1674_v39  ;;  %v1895_v43 = vld [vmem:[#allocation6 + $0x4] sm:$0xf0]  ;;  %v1894_v44 = vld [vmem:[#allocation6 + $0x4] sm:$0xf]  ;;  %v1666_v45 = vld [vmem:[#allocation6 + $0x8] sm:$0xf0] }
  0x22   :  { %1991 = vmatpush.bf16.msra.mxu2 %v1705_v16  ;;  %297 = vmatpush.bf16.msra.mxu0 %v1705_v16  ;;  %v1784_v46 = vld [vmem:[#allocation9 + $0x70] sm:$0xf]  ;;  %v1925_v47 = vld [vmem:[#allocation9 + $0x74] sm:$0xf0]  ;;  %v1924_v48 = vld [vmem:[#allocation9 + $0x74] sm:$0xf]  ;;  %v1665_v50 = vor.u32 %v1895_v43, %v1664_v42  ;;  %v1669_v51 = vor.u32 %v1894_v44, %v1666_v45 }
  0x23   :  { %1999 = vmatpush.bf16.msra.mxu3 %v1709_v17  ;;  %346 = vmatpush.bf16.msra.mxu1 %v1709_v17  ;;  %v1786_v49 = vld [vmem:[#allocation9 + $0x78] sm:$0xf0]  ;;  %v1785_v52 = vor.u32 %v1925_v47, %v1784_v46  ;;  %v1776_v55 = vld [vmem:[#allocation9 + $0x60] sm:$0xf]  ;;  %v1923_v56 = vld [vmem:[#allocation9 + $0x64] sm:$0xf0] }
  0x24   :  { %v2366_v53 = vld [vmem:[#allocation3 + $0x20] sm:$0xff]  ;;  %v1789_v54 = vor.u32 %v1924_v48, %v1786_v49  ;;  %v1778_v59 = vld [vmem:[#allocation9 + $0x68] sm:$0xf0]  ;;  %v1777_v60 = vor.u32 %v1923_v56, %v1776_v55  ;;  %v1768_v62 = vld [vmem:[#allocation9 + $0x50] sm:$0xf]  ;;  %s1615_s8 = sshll.u32 %s3693_s7, 4  ;;  %s1616_s8 = int_to_ptr.hbm [resolvable:$true] %s1615_s8 }
  0x25   :  { %v2368_v57 = vld [vmem:[#allocation3] sm:$0xff]  ;;  %v1921_v63 = vld [vmem:[#allocation9 + $0x54] sm:$0xf0]  ;;  %v1920_v0 = vld [vmem:[#allocation9 + $0x54] sm:$0xf] }
  0x26   :  { %1992 = vmatpush.bf16.msra.mxu2 %v1697_v22  ;;  %298 = vmatpush.bf16.msra.mxu0 %v1697_v22  ;;  %v1922_v58 = vld [vmem:[#allocation9 + $0x64] sm:$0xf]  ;;  %v1770_v1 = vld [vmem:[#allocation9 + $0x58] sm:$0xf0]  ;;  %v1769_v2 = vor.u32 %v1921_v63, %v1768_v62  ;;  %v1760_v4 = vld [vmem:[#allocation9 + $0x40] sm:$0xf] }
  0x27   :  { %2000 = vmatpush.bf16.msra.mxu3 %v1701_v23  ;;  %347 = vmatpush.bf16.msra.mxu1 %v1701_v23  ;;  %v1781_v61 = vor.u32 %v1922_v58, %v1778_v59  ;;  %v1773_v3 = vor.u32 %v1920_v0, %v1770_v1  ;;  %v1919_v5 = vld [vmem:[#allocation9 + $0x44] sm:$0xf0]  ;;  %v1918_v6 = vld [vmem:[#allocation9 + $0x44] sm:$0xf]  ;;  %v1762_v7 = vld [vmem:[#allocation9 + $0x48] sm:$0xf0] }
  0x28   :  { %v1761_v8 = vor.u32 %v1919_v5, %v1760_v4  ;;  %v1765_v9 = vor.u32 %v1918_v6, %v1762_v7  ;;  %v1752_v10 = vld [vmem:[#allocation9 + $0x30] sm:$0xf]  ;;  %v1917_v11 = vld [vmem:[#allocation9 + $0x34] sm:$0xf0]  ;;  %v1916_v12 = vld [vmem:[#allocation9 + $0x34] sm:$0xf] }
  0x29   :  { %v1754_v13 = vld [vmem:[#allocation9 + $0x38] sm:$0xf0]  ;;  %v1753_v14 = vor.u32 %v1917_v11, %v1752_v10  ;;  %v1891_v15 = vld [vmem:[#allocation3 + $0x28] sm:$0xff]  ;;  %v1744_v17 = vld [vmem:[#allocation9 + $0x20] sm:$0xf] }
  0x2a   :  { %1993 = vmatpush.bf16.msra.mxu2 %v1689_v28  ;;  %299 = vmatpush.bf16.msra.mxu0 %v1689_v28  ;;  %v1757_v16 = vor.u32 %v1916_v12, %v1754_v13  ;;  %v1915_v18 = vld [vmem:[#allocation9 + $0x24] sm:$0xf0]  ;;  %v1914_v20 = vld [vmem:[#allocation9 + $0x24] sm:$0xf]  ;;  %v1746_v21 = vld [vmem:[#allocation9 + $0x28] sm:$0xf0] }
  0x2b   :  { %2001 = vmatpush.bf16.msra.mxu3 %v1693_v29  ;;  %348 = vmatpush.bf16.msra.mxu1 %v1693_v29  ;;  %v1887_v19 = vld [vmem:[#allocation3 + $0x8] sm:$0xff]  ;;  %v1745_v22 = vor.u32 %v1915_v18, %v1744_v17  ;;  %v1749_v23 = vor.u32 %v1914_v20, %v1746_v21  ;;  %v1736_v24 = vld [vmem:[#allocation9 + $0x10] sm:$0xf]  ;;  %v1913_v25 = vld [vmem:[#allocation9 + $0x14] sm:$0xf0] }
  0x2c   :  { %v1912_v26 = vld [vmem:[#allocation9 + $0x14] sm:$0xf]  ;;  %v1737_v27 = vor.u32 %v1913_v25, %v1736_v24  ;;  %v1738_v28 = vld [vmem:[#allocation9 + $0x18] sm:$0xf0]  ;;  %v1728_v30 = vld [vmem:[#allocation9] sm:$0xf] }
  0x2d   :  { %v1741_v29 = vor.u32 %v1912_v26, %v1738_v28  ;;  %v1911_v31 = vld [vmem:[#allocation9 + $0x4] sm:$0xf0]  ;;  %v1910_v32 = vld [vmem:[#allocation9 + $0x4] sm:$0xf]  ;;  %v1730_v33 = vld [vmem:[#allocation9 + $0x8] sm:$0xf0] }
  0x2e   :  { %1994 = vmatpush.bf16.msra.mxu2 %v1681_v34  ;;  %300 = vmatpush.bf16.msra.mxu0 %v1681_v34  ;;  %v1729_v34 = vor.u32 %v1911_v31, %v1728_v30  ;;  %v1892_v36 = vld [vmem:[#allocation3 + $0x30] sm:$0xff]  ;;  %v1893_v38 = vld [vmem:[#allocation3 + $0x38] sm:$0xff]  ;;  %v158_v44 = vld [vmem:[#allocation8] sm:$0x3] }
  0x2f   :  { %2002 = vmatpush.bf16.msra.mxu3 %v1685_v35  ;;  %349 = vmatpush.bf16.msra.mxu1 %v1685_v35  ;;  %v1733_v35 = vor.u32 %v1910_v32, %v1730_v33  ;;  %v1888_v37 = vld [vmem:[#allocation3 + $0x10] sm:$0xff]  ;;  %v1889_v39 = vld [vmem:[#allocation3 + $0x18] sm:$0xff]  ;;  %v159_v45 = vunpack.c.l.bf16 %v158_v44  ;;  %v1930_v26 = vld [vmem:[#allocation11 + $0x20] sm:$0xff] }
  0x30   :  { %v1933_v42 = vld [vmem:[#allocation11 + $0x38] sm:$0xff]  ;;  %v1939_v6 = vld [vmem:[#allocation11 + $0x68] sm:$0xff] }
  0x31   :  { %v1941_v43 = vld [vmem:[#allocation11 + $0x78] sm:$0xff]  ;;  %v161_v48 = vperm.slane %v159_v45, 0  ;;  %v162_v49 = vperm.slane %v159_v45, 2 }
  0x32   :  { %1995 = vmatpush.bf16.msra.mxu2 %v1673_v40  ;;  %301 = vmatpush.bf16.msra.mxu0 %v1673_v40 }
  0x33   :  { %2003 = vmatpush.bf16.msra.mxu3 %v1677_v41  ;;  %350 = vmatpush.bf16.msra.mxu1 %v1677_v41  ;;  %v2380_v55 = vperm.slane %v162_v49, 0 }
  0x36   :  { %1996 = vmatpush.bf16.msra.mxu2 %v1665_v50  ;;  %302 = vmatpush.bf16.msra.mxu0 %v1665_v50  ;;  %v1932_v50 = vld [vmem:[#allocation11 + $0x30] sm:$0xff] }
  0x37   :  { %2004 = vmatpush.bf16.msra.mxu3 %v1669_v51  ;;  %351 = vmatpush.bf16.msra.mxu1 %v1669_v51  ;;  %v1940_v51 = vld [vmem:[#allocation11 + $0x70] sm:$0xff] }
  0x39   :  { %323 = vmatmul.bf16.vlgmr.msra.gmra.mxu2 %v2366_v53  ;;  %303 = vmatmul.bf16.vlgmr.msra.gmra.mxu0 %v2368_v57 }
  0x3a   :  { %498 = vmatpush.bf16.msrb.mxu2 %v1785_v52  ;;  %372 = vmatmul.bf16.vlgmr.msra.gmra.mxu3 %v2366_v53 }
  0x3b   :  { %547 = vmatpush.bf16.msrb.mxu3 %v1789_v54  ;;  %352 = vmatmul.bf16.vlgmr.msra.gmra.mxu1 %v2368_v57  ;;  %v2378_v54 = vperm.slane %v161_v48, 0 }
  0x3c   :  { %1428 = vmatpush.bf16.msrb.mxu0 %v1933_v42  ;;  %1477 = vmatpush.bf16.msrb.mxu1 %v1941_v43 }
  0x3e   :  { %499 = vmatpush.bf16.msrb.mxu2 %v1777_v60 }
  0x3f   :  { %548 = vmatpush.bf16.msrb.mxu3 %v1781_v61 }
  0x40   :  { %1429 = vmatpush.bf16.msrb.mxu0 %v1932_v50  ;;  %1478 = vmatpush.bf16.msrb.mxu1 %v1940_v51 }
  0x42   :  { %500 = vmatpush.bf16.msrb.mxu2 %v1769_v2 }
  0x43   :  { %549 = vmatpush.bf16.msrb.mxu3 %v1773_v3  ;;  %v1931_v3 = vld [vmem:[#allocation11 + $0x28] sm:$0xff] }
  0x44   :  { %1430 = vmatpush.bf16.msrb.mxu0 %v1931_v3  ;;  %1479 = vmatpush.bf16.msrb.mxu1 %v1939_v6 }
  0x46   :  { %501 = vmatpush.bf16.msrb.mxu2 %v1761_v8 }
  0x47   :  { %550 = vmatpush.bf16.msrb.mxu3 %v1765_v9 }
  0x48   :  { %1431 = vmatpush.bf16.msrb.mxu0 %v1930_v26 }
  0x49   :  { %328 = vmatmul.bf16.gmra.mxu2 %v1891_v15  ;;  %308 = vmatmul.bf16.gmra.mxu0 %v1887_v19 }
  0x4a   :  { %502 = vmatpush.bf16.msrb.mxu2 %v1753_v14  ;;  %377 = vmatmul.bf16.gmra.mxu3 %v1891_v15 }
  0x4b   :  { %551 = vmatpush.bf16.msrb.mxu3 %v1757_v16  ;;  %357 = vmatmul.bf16.gmra.mxu1 %v1887_v19 }
  0x4e   :  { %503 = vmatpush.bf16.msrb.mxu2 %v1745_v22 }
  0x4f   :  { %552 = vmatpush.bf16.msrb.mxu3 %v1749_v23 }
  0x52   :  { %504 = vmatpush.bf16.msrb.mxu2 %v1737_v27  ;;  %v1938_v27 = vld [vmem:[#allocation11 + $0x60] sm:$0xff] }
  0x53   :  { %553 = vmatpush.bf16.msrb.mxu3 %v1741_v29  ;;  %1480 = vmatpush.bf16.msrb.mxu1 %v1938_v27 }
  0x56   :  { %505 = vmatpush.bf16.msrb.mxu2 %v1729_v34 }
  0x57   :  { %554 = vmatpush.bf16.msrb.mxu3 %v1733_v35 }
  0x59   :  { %333 = vmatmul.bf16.gmra.mxu2 %v1892_v36  ;;  %313 = vmatmul.bf16.gmra.mxu0 %v1888_v37 }
  0x5a   :  { %382 = vmatmul.bf16.gmra.mxu3 %v1892_v36 }
  0x5b   :  { %362 = vmatmul.bf16.gmra.mxu1 %v1888_v37 }
  0x69   :  { %338 = vmatmul.bf16.gmra.mxu2 %v1893_v38  ;;  %318 = vmatmul.bf16.gmra.mxu0 %v1889_v39 }
  0x6a   :  { %387 = vmatmul.bf16.gmra.mxu3 %v1893_v38 }
  0x6b   :  { %367 = vmatmul.bf16.gmra.mxu1 %v1889_v39 }
  0x79   :  { %506 = vmatmul.bf16.vlgmr.msrb.gmra.mxu2 %v2368_v57 }
  0x7a   :  { %555 = vmatmul.bf16.vlgmr.msrb.gmra.mxu3 %v2368_v57 }
  0x89   :  { %511 = vmatmul.bf16.gmra.mxu2 %v1887_v19 }
  0x8a   :  { %560 = vmatmul.bf16.gmra.mxu3 %v1887_v19 }
  0x99   :  { %516 = vmatmul.bf16.gmra.mxu2 %v1888_v37 }
  0x9a   :  { %565 = vmatmul.bf16.gmra.mxu3 %v1888_v37 }
  0xa9   :  { %521 = vmatmul.bf16.gmra.mxu2 %v1889_v39 }
  0xaa   :  { %570 = vmatmul.bf16.gmra.mxu3 %v1889_v39 }
  0xb6   :  { %v304_v52 = vpop.f32.mrf.mxu0 }
  0xb7   :  { %v2383_v56 = vadd.f32 %v304_v52, %v2378_v54 }
  0xb9   :  { %526 = vmatmul.bf16.gmra.mxu2 %v2366_v53  ;;  %v1790_v60 = vmul.f32 -1.442695, %v2383_v56 }
  0xba   :  { %575 = vmatmul.bf16.gmra.mxu3 %v2366_v53  ;;  %v353_v53 = vpop.f32.mrf.mxu1 }
  0xbb   :  { %v2386_v57 = vadd.f32 %v353_v53, %v2380_v55  ;;  %2015 = vpow2.f32 %v1790_v60 }
  0xbc   :  { %v324_v40 = vpop.f32.mrf.mxu2 }
  0xbd   :  { %v373_v41 = vpop.f32.mrf.mxu3  ;;  %v1791_v61 = vmul.f32 -1.442695, %v2386_v57  ;;  %v2395_v62 = vadd.f32 %v324_v40, %v2378_v54 }
  0xbe   :  { %v306_v63 = vpop.f32.mrf.mxu0  ;;  %v2398_v0 = vadd.f32 %v373_v41, %v2380_v55 }
  0xbf   :  { %2017 = vpow2.f32 %v1791_v61  ;;  %v2401_v2 = vadd.f32 %v306_v63, %v2378_v54  ;;  %v1806_v4 = vmul.f32 -1.442695, %v2395_v62 }
  0xc0   :  { %v1807_v7 = vmul.f32 -1.442695, %v2398_v0 }
  0xc1   :  { %v1792_v8 = vmul.f32 -1.442695, %v2401_v2  ;;  %v2016_v11 = vpop.eup %2015  ;;  %2019 = vpow2.f32 %v1806_v4 }
  0xc2   :  { %v355_v1 = vpop.f32.mrf.mxu1  ;;  %2021 = vpow2.f32 %v1807_v7 }
  0xc3   :  { %v2405_v5 = vadd.f32 %v355_v1, %v2380_v55  ;;  %2023 = vpow2.f32 %v1792_v8  ;;  %v1929_v8 = vld [vmem:[#allocation11 + $0x18] sm:$0xff] }
  0xc4   :  { %v326_v46 = vpop.f32.mrf.mxu2  ;;  %1432 = vmatpush.bf16.msrb.mxu0 %v1929_v8 }
  0xc5   :  { %v375_v47 = vpop.f32.mrf.mxu3  ;;  %v1793_v12 = vmul.f32 -1.442695, %v2405_v5  ;;  %v2018_v13 = vpop.eup %2017  ;;  %v2415_v14 = vadd.f32 %v326_v46, %v2378_v54 }
  0xc6   :  { %v2419_v16 = vadd.f32 1.0, %v2018_v13  ;;  %v2435_v29 = vadd.f32 %v375_v47, %v2380_v55  ;;  %v309_v34 = vpop.f32.mrf.mxu0 }
  0xc7   :  { %2025 = vpow2.f32 %v1793_v12  ;;  %v1808_v17 = vmul.f32 -1.442695, %v2415_v14  ;;  %v2020_v18 = vpop.eup %2019  ;;  %v2454_v39 = vadd.f32 %v309_v34, %v2378_v54 }
  0xc8   :  { %v2022_v19 = vpop.eup %2021  ;;  %v2424_v21 = vadd.f32 1.0, %v2020_v18  ;;  %vm744_vm1 = vweird.f32 %v2419_v16  ;;  %v750_v49 = vand.u32 2147483648, %v2419_v16  ;;  %v748_v3 = vand.u32 2147483647, %v2419_v16 }
  0xc9   :  { %531 = vmatmul.bf16.gmra.mxu2 %v1891_v15  ;;  %v2024_v20 = vpop.eup %2023  ;;  %v2430_v25 = vadd.f32 1.0, %v2022_v19  ;;  %v1794_v52 = vmul.f32 -1.442695, %v2454_v39 }
  0xca   :  { %580 = vmatmul.bf16.gmra.mxu3 %v1891_v15  ;;  %v2417_v15 = vadd.f32 1.0, %v2016_v11  ;;  %v2432_v28 = vadd.f32 1.0, %v2024_v20  ;;  %v358_v40 = vpop.f32.mrf.mxu1  ;;  %v975_v4 = vand.u32 2147483648, %v2424_v21  ;;  %v1937_v11 = vld [vmem:[#allocation11 + $0x58] sm:$0xff]  ;;  %v2497_v12 = vor.u32 1.1754944e-38, %v750_v49 }
  0xcb   :  { %v2459_v42 = vadd.f32 %v358_v40, %v2380_v55  ;;  %v990_v13 = vand.u32 2147483648, %v2430_v25  ;;  %1481 = vmatpush.bf16.msrb.mxu1 %v1937_v11  ;;  %vm2513_vm5 = vcmp.eq.f32.partialorder %v748_v3, 8.507059e+37  ;;  %vm969_vm6 = vweird.f32 %v2424_v21 }
  0xcc   :  { %v2388_v58 = vpop.f32.mrf.mxu2  ;;  %2027 = vrcp.f32 %v2417_v15  ;;  %v735_v35 = vand.u32 2147483648, %v2417_v15  ;;  %vm729_vm0 = vweird.f32 %v2417_v15  ;;  %v733_v47 = vand.u32 2147483647, %v2417_v15 }
  0xcd   :  { %v2390_v59 = vpop.f32.mrf.mxu3  ;;  %2029 = vrcp.f32 %v2419_v16  ;;  %v2026_v24 = vpop.eup %2025  ;;  %v1795_v61 = vmul.f32 -1.442695, %v2459_v42  ;;  %v2484_v63 = vadd.f32 %v2388_v58, %v2378_v54  ;;  %v973_v58 = vand.u32 2147483647, %v2424_v21 }
  0xce   :  { %2031 = vpow2.f32 %v1808_v17  ;;  %v2440_v31 = vadd.f32 1.0, %v2026_v24  ;;  %v2471_v48 = vor.u32 1.1754944e-38, %v735_v35  ;;  %v2494_v7 = vadd.f32 %v2390_v59, %v2380_v55  ;;  %v311_v59 = vpop.f32.mrf.mxu0 }
  0xcf   :  { %2033 = vrcp.f32 %v2424_v21  ;;  %3705 = vst [vmem:[#allocation17_spill] sm:$0xff] %v2484_v63  ;;  %vm2505_vm3 = vcmp.eq.f32.partialorder %v733_v47, 8.507059e+37  ;;  %v1810_v27 = vmul.f32 -1.442695, %v2484_v63  ;;  %v2518_v35 = vor.u32 1.1754944e-38, %v975_v4 }
  0xd0   :  { %2035 = vrcp.f32 %v2430_v25  ;;  %3706 = vst [vmem:[#allocation18_spill] sm:$0xff] %v2494_v7  ;;  %vm984_vm7 = vweird.f32 %v2430_v25  ;;  %v988_v40 = vand.u32 2147483647, %v2430_v25  ;;  %v2525_v47 = vor.u32 1.1754944e-38, %v990_v13 }
  0xd1   :  { %2037 = vrcp.f32 %v2432_v28  ;;  %vm759_vm8 = vweird.f32 %v2432_v28  ;;  %v2529_v49 = vadd.f32 %v311_v59, %v2378_v54  ;;  %vm774_vm13 = vweird.f32 %v2440_v31 }
  0xd2   :  { %v2437_v30 = vpop.eup %2027  ;;  %2039 = vrcp.f32 %v2440_v31  ;;  %v360_v13 = vpop.f32.mrf.mxu1  ;;  %vm2571_vm14 = vcmp.eq.f32.partialorder %v973_v58, 8.507059e+37  ;;  %vm2575_vm15 = vcmp.eq.f32.partialorder %v988_v40, 8.507059e+37 }
  0xd3   :  { %v2442_v32 = vpop.eup %2029  ;;  %v725_v37 = vmul.f32 %v2437_v30, %v2417_v15  ;;  %vm730_vm2 = vweird.f32 %v2437_v30 }
  0xd4   :  { %v2409_v9 = vpop.f32.mrf.mxu2  ;;  %v2032_v33 = vpop.eup %2031  ;;  %vm745_vm4 = vweird.f32 %v2442_v32  ;;  %vm2536_vm9 = vmor %vm729_vm0, %vm730_vm2 }
  0xd5   :  { %v2411_v10 = vpop.f32.mrf.mxu3  ;;  %v2456_v41 = vadd.f32 1.0, %v2032_v33  ;;  %v2461_v43 = vpop.eup %2033  ;;  %v726_v50 = vsub.f32 1.0, %v725_v37  ;;  %v1811_v37 = vmul.f32 -1.442695, %v2494_v7  ;;  %vm2550_vm10 = vmor %vm744_vm1, %vm745_vm4 }
  0xd6   :  { %v2468_v46 = vpop.eup %2035  ;;  %v965_v60 = vmul.f32 %v2461_v43, %v2424_v21  ;;  %vm970_vm11 = vweird.f32 %v2461_v43  ;;  %v2709_v7 = vadd.f32 %v2411_v10, %v2380_v55 }
  0xd7   :  { %v2476_v53 = vpop.eup %2037  ;;  %v980_v6 = vmul.f32 %v2468_v46, %v2430_v25  ;;  %v727_v17 = vmul.f32 %v2437_v30, %v726_v50  ;;  %vm985_vm12 = vweird.f32 %v2468_v46  ;;  %vm2600_vm2 = vmor %vm969_vm6, %vm970_vm11 }
  0xd8   :  { %v2486_v1 = vpop.eup %2039  ;;  %v755_v19 = vmul.f32 %v2476_v53, %v2432_v28  ;;  %v966_v24 = vsub.f32 1.0, %v965_v60  ;;  %vm760_vm1 = vweird.f32 %v2476_v53  ;;  %vm2614_vm6 = vmor %vm984_vm7, %vm985_vm12  ;;  %3736 = vst [vmem:[#allocation24_spill] sm:$0xff] %v2709_v7 }
  0xd9   :  { %536 = vmatmul.bf16.gmra.mxu2 %v1892_v36  ;;  %v770_v26 = vmul.f32 %v2486_v1, %v2440_v31  ;;  %v728_v50 = vadd.f32 %v2437_v30, %v727_v17  ;;  %vm775_vm4 = vweird.f32 %v2486_v1 }
  0xda   :  { %585 = vmatmul.bf16.gmra.mxu3 %v1892_v36  ;;  %v1809_v36 = vmul.f32 -1.442695, %v2435_v29  ;;  %v756_v60 = vsub.f32 1.0, %v755_v19  ;;  %v967_v15 = vmul.f32 %v2461_v43, %v966_v24  ;;  %v765_v19 = vand.u32 2147483648, %v2432_v28 }
  0xdb   :  { %v771_v8 = vsub.f32 1.0, %v770_v26  ;;  %v1796_v24 = vmul.f32 -1.442695, %v2529_v49  ;;  %v732_v26 = vsel %vm2536_vm9, %v2437_v30, %v728_v50  ;;  %v2585_v30 = vadd.f32 %v360_v13, %v2380_v55 }
  0xdc   :  { %v2426_v22 = vpop.f32.mrf.mxu2  ;;  %2041 = vpow2.f32 %v1809_v36  ;;  %v981_v36 = vsub.f32 1.0, %v980_v6  ;;  %v968_v50 = vadd.f32 %v2461_v43, %v967_v15  ;;  %v778_v6 = vand.u32 2147483647, %v2440_v31 }
  0xdd   :  { %v2428_v23 = vpop.f32.mrf.mxu3  ;;  %2043 = vrcp.f32 %v2456_v41  ;;  %v780_v15 = vand.u32 2147483648, %v2440_v31  ;;  %v737_v13 = vsel %vm2505_vm3, %v2471_v48, %v732_v26  ;;  %vm2630_vm3 = vmor %vm759_vm8, %vm760_vm1  ;;  %vm999_vm9 = vweird.f32 %v2456_v41 }
  0xde   :  { %2045 = vpow2.f32 %v1794_v52  ;;  %v972_v48 = vsel %vm2600_vm2, %v2461_v43, %v968_v50  ;;  %vm2660_vm7 = vcmp.eq.f32.partialorder %v778_v6, 8.507059e+37 }
  0xdf   :  { %2047 = vpow2.f32 %v1795_v61  ;;  %v763_v61 = vand.u32 2147483647, %v2432_v28  ;;  %v977_v6 = vsel %vm2571_vm14, %v2518_v35, %v972_v48  ;;  %v363_v35 = vpop.f32.mrf.mxu1 }
  0xe0   :  { %2049 = vpow2.f32 %v1810_v27  ;;  %v2701_v21 = vmul.f32 %v977_v6, %v2395_v62  ;;  %v2742_v31 = vadd.f32 %v363_v35, %v2380_v55 }
  0xe1   :  { %2051 = vpow2.f32 %v1811_v37  ;;  %v757_v37 = vmul.f32 %v2476_v53, %v756_v60  ;;  %vm2580_vm0 = vcmp.eq.f32.partialorder %v763_v61, 8.507059e+37 }
  0xe2   :  { %v2042_v33 = vpop.eup %2041  ;;  %3735 = vst [vmem:[#allocation23_spill] sm:$0xff] %v2701_v21 }
  0xe3   :  { %v2555_v11 = vadd.f32 1.0, %v2042_v33  ;;  %3743 = vst [vmem:[#allocation27_spill] sm:$0xff] %v2742_v31 }
  0xe4   :  { %v2464_v44 = vpop.f32.mrf.mxu2 }
  0xe5   :  { %v2466_v45 = vpop.f32.mrf.mxu3  ;;  %2053 = vrcp.f32 %v2555_v11  ;;  %vm1014_vm12 = vweird.f32 %v2555_v11 }
  0xe6   :  { %2055 = vpow2.f32 %v1796_v24 }
  0xe9   :  { %541 = vmatmul.bf16.gmra.mxu2 %v1893_v38 }
  0xea   :  { %590 = vmatmul.bf16.gmra.mxu3 %v1893_v38  ;;  %v740_v38 = vmul.f32 %v2442_v32, %v2419_v16 }
  0xec   :  { %v741_v51 = vsub.f32 1.0, %v740_v38  ;;  %v2521_v38 = vpop.eup %2043  ;;  %v2542_v3 = vpop.f32.mrf.mxu2 }
  0xed   :  { %v2544_v4 = vpop.f32.mrf.mxu3  ;;  %v2046_v17 = vpop.eup %2045  ;;  %v995_v59 = vmul.f32 %v2521_v38, %v2456_v41  ;;  %vm1000_vm8 = vweird.f32 %v2521_v38 }
  0xee   :  { %v742_v18 = vmul.f32 %v2442_v32, %v741_v51  ;;  %3713 = vst [vmem:[#allocation19_spill] sm:$0xff] %v2544_v4  ;;  %v2048_v16 = vpop.eup %2047  ;;  %v2590_v58 = vadd.f32 1.0, %v2046_v17  ;;  %v758_v17 = vadd.f32 %v2476_v53, %v757_v37 }
  0xef   :  { %v996_v51 = vsub.f32 1.0, %v995_v59  ;;  %v2050_v60 = vpop.eup %2049  ;;  %v1797_v59 = vmul.f32 -1.442695, %v2585_v30 }
  0xf0   :  { %v743_v52 = vadd.f32 %v2442_v32, %v742_v18  ;;  %v982_v18 = vmul.f32 %v2468_v46, %v981_v36  ;;  %2057 = vrcp.f32 %v2590_v58  ;;  %v2649_v34 = vadd.f32 1.0, %v2050_v60  ;;  %v1936_v60 = vld [vmem:[#allocation11 + $0x50] sm:$0xff] }
  0xf1   :  { %v997_v28 = vmul.f32 %v2521_v38, %v996_v51  ;;  %v314_v51 = vpop.f32.mrf.mxu0  ;;  %1482 = vmatpush.bf16.msrb.mxu1 %v1936_v60  ;;  %vm789_vm14 = vweird.f32 %v2590_v58 }
  0xf2   :  { %v747_v27 = vsel %vm2550_vm10, %v2442_v32, %v743_v52  ;;  %v772_v32 = vmul.f32 %v2486_v1, %v771_v8  ;;  %v983_v40 = vadd.f32 %v2468_v46, %v982_v18  ;;  %v2594_v52 = vadd.f32 1.0, %v2048_v16  ;;  %v2052_v8 = vpop.eup %2051  ;;  %vm2716_vm10 = vmor %vm999_vm9, %vm1000_vm8 }
  0xf3   :  { %v766_v18 = vor.u32 1.1754944e-38, %v765_v19  ;;  %v752_v16 = vsel %vm2513_vm5, %v2497_v12, %v747_v27  ;;  %vm2643_vm5 = vmor %vm774_vm13, %vm775_vm4  ;;  %v2655_v26 = vpop.eup %2053  ;;  %v781_v27 = vor.u32 1.1754944e-38, %v780_v15  ;;  %v2664_v37 = vadd.f32 1.0, %v2052_v8 }
  0xf4   :  { %v773_v20 = vadd.f32 %v2486_v1, %v772_v32  ;;  %v987_v12 = vsel %vm2614_vm6, %v2468_v46, %v983_v40  ;;  %2059 = vrcp.f32 %v2594_v52  ;;  %v2651_v19 = vpop.f32.mrf.mxu2  ;;  %v2658_v46 = vmul.f32 %v737_v13, %v2383_v56  ;;  %v1928_v56 = vld [vmem:[#allocation11 + $0x10] sm:$0xff]  ;;  %v2056_v61 = vpop.eup %2055 }
  0xf5   :  { %3730 = vst [vmem:[#allocation20_spill] sm:$0xff] %v2651_v19  ;;  %v2653_v24 = vpop.f32.mrf.mxu3  ;;  %v2667_v50 = vmul.f32 %v752_v16, %v2386_v57  ;;  %v762_v32 = vsel %vm2630_vm3, %v2476_v53, %v758_v17  ;;  %v1003_v40 = vand.u32 2147483647, %v2456_v41  ;;  %2061 = vpow2.f32 %v1797_v59  ;;  %1433 = vmatpush.bf16.msrb.mxu0 %v1928_v56  ;;  %v1934_v19 = vld [vmem:[#allocation11 + $0x40] sm:$0xff] }
  0xf6   :  { %3731 = vst [vmem:[#allocation21_spill] sm:$0xff] %v2653_v24  ;;  %v992_v57 = vsel %vm2575_vm15, %v2525_v47, %v987_v12  ;;  %v777_v15 = vsel %vm2643_vm5, %v2486_v1, %v773_v20  ;;  %v1005_v53 = vand.u32 2147483648, %v2456_v41  ;;  %v998_v8 = vadd.f32 %v2521_v38, %v997_v28  ;;  %v2688_v33 = vpop.eup %2057  ;;  %v1926_v24 = vld [vmem:[#allocation11] sm:$0xff] }
  0xf7   :  { %v1010_v13 = vmul.f32 %v2655_v26, %v2555_v11  ;;  %2063 = vrcp.f32 %v2649_v34  ;;  %v767_v47 = vsel %vm2580_vm0, %v766_v18, %v762_v32  ;;  %v2696_v1 = vadd.f32 %v2409_v9, %v2378_v54 }
  0xf8   :  { %2065 = vrcp.f32 %v2664_v37  ;;  %v782_v17 = vsel %vm2660_vm7, %v781_v27, %v777_v15  ;;  %v2705_v59 = vadd.f32 1.0, %v2056_v61  ;;  %v2712_v41 = vmul.f32 %v992_v57, %v2398_v0 }
  0xf9   :  { %3734 = vst [vmem:[#allocation22_spill] sm:$0xff] %v2696_v1  ;;  %vm2720_vm11 = vcmp.eq.f32.partialorder %v1003_v40, 8.507059e+37  ;;  %v1006_v18 = vor.u32 1.1754944e-38, %v1005_v53  ;;  %v2725_v16 = vadd.f32 %v314_v51, %v2378_v54  ;;  %v2728_v10 = vmul.f32 %v767_v47, %v2401_v2 }
  0xfa   :  { %v2698_v36 = vpop.eup %2059  ;;  %3737 = vst [vmem:[#allocation25_spill] sm:$0xff] %v2712_v41  ;;  %v1002_v0 = vsel %vm2716_vm10, %v2521_v38, %v998_v8  ;;  %v1011_v25 = vsub.f32 1.0, %v1010_v13  ;;  %v785_v20 = vmul.f32 %v2688_v33, %v2590_v58  ;;  %v2736_v12 = vmul.f32 %v782_v17, %v2405_v5  ;;  %v316_v8 = vpop.f32.mrf.mxu0 }
  0xfb   :  { %3742 = vst [vmem:[#allocation26_spill] sm:$0xff] %v2725_v16  ;;  %v2062_v48 = vpop.eup %2061  ;;  %v800_v43 = vmul.f32 %v2698_v36, %v2594_v52  ;;  %v1812_v28 = vmul.f32 -1.442695, %v2696_v1  ;;  %v1018_v27 = vand.u32 2147483647, %v2555_v11  ;;  %v1020_v38 = vand.u32 2147483648, %v2555_v11 }
  0xfc   :  { %2067 = vrcp.f32 %v2705_v59  ;;  %v1813_v32 = vmul.f32 -1.442695, %v2709_v7  ;;  %v2750_v5 = vpop.f32.mrf.mxu2  ;;  %v1007_v56 = vsel %vm2720_vm11, %v1006_v18, %v1002_v0  ;;  %v2759_v60 = vadd.f32 1.0, %v2062_v48  ;;  %v365_v48 = vpop.f32.mrf.mxu1 }
  0xfd   :  { %v2744_v2 = vpop.eup %2063  ;;  %v2752_v40 = vpop.f32.mrf.mxu3  ;;  %v1798_v61 = vmul.f32 -1.442695, %v2725_v16  ;;  %v1012_v6 = vmul.f32 %v2655_v26, %v1011_v25  ;;  %v786_v57 = vsub.f32 1.0, %v785_v20  ;;  %v793_v15 = vand.u32 2147483647, %v2590_v58  ;;  %v1927_v25 = vld [vmem:[#allocation11 + $0x8] sm:$0xff] }
  0xfe   :  { %v2754_v51 = vpop.eup %2065  ;;  %v795_v53 = vand.u32 2147483648, %v2590_v58  ;;  %v801_v13 = vsub.f32 1.0, %v800_v43  ;;  %v808_v35 = vand.u32 2147483647, %v2594_v52  ;;  %v810_v47 = vand.u32 2147483648, %v2594_v52  ;;  %v1935_v20 = vld [vmem:[#allocation11 + $0x48] sm:$0xff]  ;;  %1434 = vmatpush.bf16.msrb.mxu0 %v1927_v25 }
  0xff   :  { %2069 = vpow2.f32 %v1812_v28  ;;  %vm2767_vm13 = vcmp.eq.f32.partialorder %v1018_v27, 8.507059e+37  ;;  %v1021_v9 = vor.u32 1.1754944e-38, %v1020_v38  ;;  %v1025_v62 = vmul.f32 %v2744_v2, %v2649_v34  ;;  %1483 = vmatpush.bf16.msrb.mxu1 %v1935_v20 }
 0x100   :  { %v1040_v18 = vmul.f32 %v2754_v51, %v2664_v37  ;;  %2071 = vpow2.f32 %v1813_v32  ;;  %v2776_v0 = vmul.f32 %v1007_v56, %v2415_v14  ;;  %vm804_vm15 = vweird.f32 %v2594_v52  ;;  %v409_v56 = vld [vmem:[%s3690_s4] sm:$0x3] }
 0x101   :  { %2073 = vrcp.f32 %v2759_v60  ;;  %v1013_v28 = vadd.f32 %v2655_v26, %v1012_v6  ;;  %vm1015_vm0 = vweird.f32 %v2655_v26  ;;  %v787_v27 = vmul.f32 %v2688_v33, %v786_v57 }
 0x102   :  { %3746 = vst [vmem:[#allocation28_spill] sm:$0xff] %v2776_v0  ;;  %v2781_v43 = vpop.eup %2067  ;;  %vm2786_vm1 = vcmp.eq.f32.partialorder %v793_v15, 8.507059e+37  ;;  %v796_v14 = vor.u32 1.1754944e-38, %v795_v53  ;;  %v802_v32 = vmul.f32 %v2698_v36, %v801_v13  ;;  %vm2791_vm2 = vcmp.eq.f32.partialorder %v808_v35, 8.507059e+37  ;;  %vm2807_vm6 = vmor %vm1014_vm12, %vm1015_vm0  ;;  %v319_v21 = vpop.f32.mrf.mxu0  ;;  %1435 = vmatpush.bf16.msrb.mxu0 %v1926_v24 }
 0x103   :  { %v2795_v7 = vor.u32 1.1754944e-38, %v810_v47  ;;  %v1033_v1 = vand.u32 2147483647, %v2649_v34  ;;  %v1035_v6 = vand.u32 2147483648, %v2649_v34  ;;  %vm790_vm4 = vweird.f32 %v2688_v33  ;;  %1484 = vmatpush.bf16.msrb.mxu1 %v1934_v19 }
 0x104   :  { %v1026_v57 = vsub.f32 1.0, %v1025_v62  ;;  %v1041_v15 = vsub.f32 1.0, %v1040_v18  ;;  %v1050_v53 = vand.u32 2147483648, %v2664_v37  ;;  %vm805_vm3 = vweird.f32 %v2698_v36  ;;  %v2827_v0 = vpop.f32.mrf.mxu2  ;;  %vm2837_vm5 = vmor %vm789_vm14, %vm790_vm4 }
 0x105   :  { %v2801_v63 = vpop.eup %2069  ;;  %v815_v35 = vmul.f32 %v2781_v43, %v2705_v59  ;;  %2075 = vpow2.f32 %v1798_v61  ;;  %v2815_v47 = vadd.f32 %v316_v8, %v2378_v54  ;;  %v1017_v18 = vsel %vm2807_vm6, %v2655_v26, %v1013_v28  ;;  %v2829_v41 = vpop.f32.mrf.mxu3  ;;  %vm2849_vm9 = vmor %vm804_vm15, %vm805_vm3 }
 0x106   :  { %v2817_v62 = vpop.eup %2071  ;;  %v788_v11 = vadd.f32 %v2688_v33, %v787_v27  ;;  %v1048_v25 = vand.u32 2147483647, %v2664_v37  ;;  %v2825_v20 = vadd.f32 %v365_v48, %v2380_v55  ;;  %v803_v26 = vadd.f32 %v2698_v36, %v802_v32 }
 0x107   :  { %v2831_v61 = vpop.eup %2073  ;;  %vm1029_vm7 = vweird.f32 %v2649_v34  ;;  %vm1044_vm8 = vweird.f32 %v2664_v37  ;;  %v1799_v48 = vmul.f32 -1.442695, %v2742_v31  ;;  %v1027_v58 = vmul.f32 %v2744_v2, %v1026_v57 }
 0x108   :  { %v1036_v27 = vor.u32 1.1754944e-38, %v1035_v6  ;;  %v1042_v13 = vmul.f32 %v2754_v51, %v1041_v15  ;;  %v1051_v32 = vor.u32 1.1754944e-38, %v1050_v53  ;;  %v1022_v31 = vsel %vm2767_vm13, %v1021_v9, %v1017_v18  ;;  %v368_v53 = vpop.f32.mrf.mxu1 }
 0x109   :  { %v816_v16 = vsub.f32 1.0, %v815_v35  ;;  %vm819_vm10 = vweird.f32 %v2705_v59  ;;  %v1800_v52 = vmul.f32 -1.442695, %v2815_v47  ;;  %v792_v4 = vsel %vm2837_vm5, %v2688_v33, %v788_v11 }
 0x10a   :  { %vm2862_vm11 = vcmp.eq.f32.partialorder %v1033_v1, 8.507059e+37  ;;  %vm2866_vm12 = vcmp.eq.f32.partialorder %v1048_v25, 8.507059e+37  ;;  %v823_v17 = vand.u32 2147483647, %v2705_v59  ;;  %v830_v9 = vmul.f32 %v2831_v61, %v2759_v60 }
 0x10b   :  { %v1801_v15 = vmul.f32 -1.442695, %v2825_v20  ;;  %v2076_v35 = vpop.eup %2075  ;;  %v807_v33 = vsel %vm2849_vm9, %v2698_v36, %v803_v26  ;;  %vm1030_vm13 = vweird.f32 %v2744_v2  ;;  %v825_v1 = vand.u32 2147483648, %v2705_v59 }
 0x10c   :  { %2077 = vpow2.f32 %v1799_v48  ;;  %v2880_v18 = vmul.f32 %v1022_v31, %v2435_v29  ;;  %v1028_v11 = vadd.f32 %v2744_v2, %v1027_v58  ;;  %v1043_v25 = vadd.f32 %v2754_v51, %v1042_v13  ;;  %vm2894_vm15 = vmor %vm1029_vm7, %vm1030_vm13 }
 0x10d   :  { %vm1045_vm14 = vweird.f32 %v2754_v51  ;;  %v797_v19 = vsel %vm2786_vm1, %v796_v14, %v792_v4  ;;  %v817_v24 = vmul.f32 %v2781_v43, %v816_v16  ;;  %v838_v36 = vand.u32 2147483647, %v2759_v60  ;;  %v2900_v4 = vpop.f32.mrf.mxu2  ;;  %v2902_v16 = vpop.f32.mrf.mxu3 }
 0x10e   :  { %2079 = vpow2.f32 %v1800_v52  ;;  %v812_v8 = vsel %vm2791_vm2, %v2795_v7, %v807_v33  ;;  %v831_v31 = vsub.f32 1.0, %v830_v9  ;;  %v2898_v26 = vadd.f32 1.0, %v2076_v35  ;;  %vm2906_vm0 = vmor %vm1044_vm8, %vm1045_vm14 }
 0x10f   :  { %2081 = vpow2.f32 %v1801_v15  ;;  %vm820_vm1 = vweird.f32 %v2781_v43  ;;  %vm2911_vm2 = vcmp.eq.f32.partialorder %v823_v17, 8.507059e+37  ;;  %v826_v7 = vor.u32 1.1754944e-38, %v825_v1 }
 0x110   :  { %v2916_v14 = vadd.f32 1.0, %v2801_v63  ;;  %v2922_v37 = vmul.f32 %v797_v19, %v2454_v39  ;;  %v1032_v48 = vsel %vm2894_vm15, %v2744_v2, %v1028_v11  ;;  %v1047_v28 = vsel %vm2906_vm0, %v2754_v51, %v1043_v25  ;;  %vm2943_vm6 = vmor %vm819_vm10, %vm820_vm1 }
 0x111   :  { %vm834_vm4 = vweird.f32 %v2759_v60  ;;  %v2932_v63 = vmul.f32 %v812_v8, %v2459_v42  ;;  %v818_v13 = vadd.f32 %v2781_v43, %v817_v24  ;;  %v2936_v52 = vadd.f32 1.0, %v2817_v62  ;;  %v321_v42 = vpop.f32.mrf.mxu0 }
 0x112   :  { %v2078_v58 = vpop.eup %2077  ;;  %v2939_v39 = vadd.f32 %v319_v21, %v2378_v54  ;;  %v832_v51 = vmul.f32 %v2831_v61, %v831_v31  ;;  %vm2948_vm3 = vcmp.eq.f32.partialorder %v838_v36, 8.507059e+37  ;;  %2083 = vrcp.f32 %v2898_v26 }
 0x113   :  { %v410_v62 = vunpack.c.l.bf16 %v409_v56  ;;  %v2955_v21 = vsel %vm2862_vm11, %v1036_v27, %v1032_v48  ;;  %v2959_v59 = vsel %vm2866_vm12, %v1051_v32, %v1047_v28  ;;  %v840_v15 = vand.u32 2147483648, %v2759_v60  ;;  %v370_v27 = vpop.f32.mrf.mxu1 }
 0x114   :  { %v2080_v9 = vpop.eup %2079  ;;  %3771 = vst [vmem:[#allocation29_spill] sm:$0xff] %v2955_v21  ;;  %2085 = vrcp.f32 %v2916_v14  ;;  %vm835_vm5 = vweird.f32 %v2831_v61  ;;  %v1065_v33 = vand.u32 2147483648, %v2916_v14  ;;  %v2965_v1 = vadd.f32 1.0, %v2078_v58 }
 0x115   :  { %3772 = vst [vmem:[#allocation30_spill] sm:$0xff] %v2959_v59  ;;  %v2082_v35 = vpop.eup %2081  ;;  %v2968_v11 = vadd.f32 %v368_v53, %v2380_v55  ;;  %v822_v32 = vsel %vm2943_vm6, %v2781_v43, %v818_v13  ;;  %2087 = vrcp.f32 %v2936_v52  ;;  %v1802_v6 = vmul.f32 -1.442695, %v2939_v39  ;;  %v2981_v53 = vpop.f32.mrf.mxu2  ;;  %vm2989_vm7 = vmor %vm834_vm4, %vm835_vm5 }
 0x116   :  { %v2976_v57 = vadd.f32 %v321_v42, %v2378_v54  ;;  %v833_v25 = vadd.f32 %v2831_v61, %v832_v51  ;;  %v2979_v19 = vadd.f32 1.0, %v2080_v9  ;;  %v412_v24 = vperm.slane %v410_v62, 0  ;;  %v2983_v8 = vpop.f32.mrf.mxu3 }
 0x117   :  { %v413_v36 = vperm.slane %v410_v62, 2  ;;  %v841_v29 = vor.u32 1.1754944e-38, %v840_v15  ;;  %v2994_v38 = vadd.f32 1.0, %v2082_v35  ;;  %v2997_v56 = vadd.f32 %v370_v27, %v2380_v55 }
 0x118   :  { %v2999_v48 = vpop.eup %2083  ;;  %v827_v28 = vsel %vm2911_vm2, %v826_v7, %v822_v32  ;;  %2089 = vrcp.f32 %v2965_v1  ;;  %v1803_v60 = vmul.f32 -1.442695, %v2968_v11  ;;  %v3008_v2 = vor.u32 1.1754944e-38, %v1065_v33 }
 0x119   :  { %v3012_v51 = vadd.f32 %v2426_v22, %v2378_v54  ;;  %2091 = vpow2.f32 %v1802_v6  ;;  %v1804_v42 = vmul.f32 -1.442695, %v2976_v57  ;;  %v837_v34 = vsel %vm2989_vm7, %v2831_v61, %v833_v25 }
 0x11a   :  { %v3006_v13 = vpop.eup %2085  ;;  %3775 = vst [vmem:[#allocation31_spill] sm:$0xff] %v3008_v2  ;;  %2093 = vrcp.f32 %v2979_v19  ;;  %v3019_v7 = vperm.slane %v412_v24, 0  ;;  %v3021_v62 = vperm.slane %v413_v36, 0  ;;  %v3026_v15 = vmul.f32 %v827_v28, %v2529_v49 }
 0x11b   :  { %3776 = vst [vmem:[#allocation32_spill] sm:$0xff] %v3012_v51  ;;  %v3023_v9 = vpop.eup %2087  ;;  %v845_v22 = vmul.f32 %v2999_v48, %v2898_v26  ;;  %2095 = vrcp.f32 %v2994_v38  ;;  %v1805_v35 = vmul.f32 -1.442695, %v2997_v56  ;;  %v1055_v61 = vmul.f32 %v3006_v13, %v2916_v14 }
 0x11c   :  { %v3037_v27 = vadd.f32 %v2428_v23, %v2380_v55  ;;  %2097 = vpow2.f32 %v1803_v60  ;;  %v842_v49 = vsel %vm2948_vm3, %v841_v29, %v837_v34  ;;  %vm849_vm8 = vweird.f32 %v2898_v26 }
 0x11d   :  { %v1814_v32 = vmul.f32 -1.442695, %v3012_v51  ;;  %2099 = vpow2.f32 %v1804_v42  ;;  %v508_v25 = vadd.f32 %v2750_v5, %v3019_v7  ;;  %v557_v24 = vadd.f32 %v2752_v40, %v3021_v62  ;;  %v3053_v36 = vpop.f32.mrf.mxu2 }
 0x11e   :  { %3777 = vst [vmem:[#allocation33_spill] sm:$0xff] %v3037_v27  ;;  %v3043_v6 = vpop.eup %2089  ;;  %v510_v23 = vadd.f32 %v2827_v0, %v3019_v7  ;;  %v559_v17 = vadd.f32 %v2829_v41, %v3021_v62  ;;  %v3055_v43 = vpop.f32.mrf.mxu3  ;;  %v1070_v28 = vmul.f32 %v3023_v9, %v2936_v52  ;;  %v846_v60 = vsub.f32 1.0, %v845_v22 }
 0x11f   :  { %v2092_v29 = vpop.eup %2091  ;;  %v3061_v5 = vadd.f32 %v2464_v44, %v2378_v54  ;;  %2101 = vpow2.f32 %v1805_v35  ;;  %v3066_v0 = vmul.f32 %v842_v49, %v2585_v30  ;;  %v853_v41 = vand.u32 2147483647, %v2898_v26 }
 0x120   :  { %v3063_v40 = vpop.eup %2093  ;;  %v855_v42 = vand.u32 2147483648, %v2898_v26  ;;  %v3072_v34 = vadd.f32 %v2466_v45, %v2380_v55  ;;  %v1056_v22 = vsub.f32 1.0, %v1055_v61  ;;  %v860_v44 = vmul.f32 %v3043_v6, %v2965_v1 }
 0x121   :  { %3778 = vst [vmem:[#allocation34_spill] sm:$0xff] %v3061_v5  ;;  %v3074_v33 = vpop.eup %2095  ;;  %2103 = vpow2.f32 %v1814_v32  ;;  %v1815_v35 = vmul.f32 -1.442695, %v3037_v27  ;;  %v1236_v30 = vmul.f32 %v2658_v46, %v508_v25  ;;  %v1237_v49 = vmul.f32 %v2667_v50, %v557_v24 }
 0x122   :  { %3779 = vst [vmem:[#allocation35_spill] sm:$0xff] %v3072_v34  ;;  %v2098_v58 = vpop.eup %2097  ;;  %v1238_v31 = vmul.f32 %v2728_v10, %v510_v23  ;;  %v1239_v51 = vmul.f32 %v2736_v12, %v559_v17  ;;  %v1071_v59 = vsub.f32 1.0, %v1070_v28  ;;  %v847_v21 = vmul.f32 %v2999_v48, %v846_v60 }
 0x123   :  { %v2100_v45 = vpop.eup %2099  ;;  %v875_v61 = vmul.f32 %v3063_v40, %v2979_v19  ;;  %v1816_v32 = vmul.f32 -1.442695, %v3061_v5  ;;  %v890_v27 = vmul.f32 %v3074_v33, %v2994_v38  ;;  %v1817_v46 = vmul.f32 -1.442695, %v3072_v34 }
 0x124   :  { %v1268_v25 = vpack.c.bf16 %v1238_v31, %v1236_v30  ;;  %v1269_v50 = vpack.c.bf16 %v1239_v51, %v1237_v49  ;;  %vm850_vm9 = vweird.f32 %v2999_v48  ;;  %v3091_v10 = vor.u32 1.1754944e-38, %v855_v42 }
 0x125   :  { %v2102_v24 = vpop.eup %2101  ;;  %v861_v12 = vsub.f32 1.0, %v860_v44  ;;  %v3093_v23 = vadd.f32 1.0, %v2092_v29  ;;  %v3096_v17 = vmul.f32 %v3006_v13, %v1056_v22  ;;  %vm3098_vm10 = vcmp.eq.f32.partialorder %v853_v41, 8.507059e+37  ;;  %v3105_v51 = vpop.f32.mrf.mxu2  ;;  %vm3119_vm11 = vmor %vm849_vm8, %vm850_vm9 }
 0x126   :  { %v868_v60 = vand.u32 2147483647, %v2965_v1  ;;  %2105 = vpow2.f32 %v1815_v35  ;;  %v3103_v31 = vadd.f32 1.0, %v2098_v58  ;;  %1436 = vmatmul.bf16.vlgmr.msrb.gmra.mxu0 %v1268_v25  ;;  %1485 = vmatmul.bf16.vlgmr.msrb.gmra.mxu1 %v1269_v50  ;;  %v3107_v42 = vpop.f32.mrf.mxu3  ;;  %v848_v44 = vadd.f32 %v2999_v48, %v847_v21 }
 0x127   :  { %v2104_v29 = vpop.eup %2103  ;;  %v876_v22 = vsub.f32 1.0, %v875_v61  ;;  %2107 = vpow2.f32 %v1816_v32  ;;  %v3110_v41 = vadd.f32 1.0, %v2100_v45  ;;  %v3113_v30 = vmul.f32 %v3023_v9, %v1071_v59 }
 0x128   :  { %v891_v35 = vsub.f32 1.0, %v890_v27  ;;  %2109 = vpow2.f32 %v1817_v46  ;;  %v3123_v49 = vadd.f32 1.0, %v2102_v24  ;;  %v862_v21 = vmul.f32 %v3043_v6, %v861_v12 }
 0x129   :  { %vm864_vm12 = vweird.f32 %v2965_v1  ;;  %v870_v45 = vand.u32 2147483648, %v2965_v1  ;;  %2111 = vrcp.f32 %v3093_v23  ;;  %vm3129_vm13 = vcmp.eq.f32.partialorder %v868_v60, 8.507059e+37 }
 0x12a   :  { %v3133_v26 = vadd.f32 1.0, %v2104_v29  ;;  %2113 = vrcp.f32 %v3103_v31  ;;  %v515_v27 = vadd.f32 %v2981_v53, %v3019_v7  ;;  %v564_v61 = vadd.f32 %v2983_v8, %v3021_v62 }
 0x12b   :  { %v852_v32 = vsel %vm3119_vm11, %v2999_v48, %v848_v44  ;;  %vm865_vm14 = vweird.f32 %v3043_v6  ;;  %v877_v46 = vmul.f32 %v3063_v40, %v876_v22  ;;  %2115 = vrcp.f32 %v3110_v41 }
 0x12c   :  { %v2106_v25 = vpop.eup %2105  ;;  %v892_v50 = vmul.f32 %v3074_v33, %v891_v35  ;;  %2117 = vrcp.f32 %v3123_v49  ;;  %v513_v53 = vadd.f32 %v2900_v4, %v3019_v7  ;;  %v562_v8 = vadd.f32 %v2902_v16, %v3021_v62  ;;  %vm3170_vm4 = vmor %vm864_vm12, %vm865_vm14 }
 0x12d   :  { %v2108_v24 = vpop.eup %2107  ;;  %v863_v48 = vadd.f32 %v3043_v6, %v862_v21  ;;  %vm879_vm15 = vweird.f32 %v2979_v19  ;;  %vm880_vm0 = vweird.f32 %v3063_v40  ;;  %v885_v12 = vand.u32 2147483648, %v2979_v19  ;;  %v3160_v44 = vpop.f32.mrf.mxu2 }
 0x12e   :  { %v2110_v60 = vpop.eup %2109  ;;  %vm894_vm1 = vweird.f32 %v2994_v38  ;;  %vm895_vm2 = vweird.f32 %v3074_v33  ;;  %v1242_v29 = vmul.f32 %v3026_v15, %v515_v27  ;;  %v1243_v4 = vmul.f32 %v3066_v0, %v564_v61  ;;  %v3162_v16 = vpop.f32.mrf.mxu3  ;;  %vm3183_vm6 = vmor %vm879_vm15, %vm880_vm0 }
 0x12f   :  { %v3164_v22 = vpop.eup %2111  ;;  %v871_v35 = vor.u32 1.1754944e-38, %v870_v45  ;;  %v878_v21 = vadd.f32 %v3063_v40, %v877_v46  ;;  %v883_v15 = vand.u32 2147483647, %v2979_v19  ;;  %v900_v0 = vand.u32 2147483648, %v2994_v38  ;;  %vm3203_vm3 = vmor %vm894_vm1, %vm895_vm2 }
 0x130   :  { %v3177_v27 = vpop.eup %2113  ;;  %v893_v1 = vadd.f32 %v3074_v33, %v892_v50  ;;  %v898_v45 = vand.u32 2147483647, %v2994_v38  ;;  %v1240_v46 = vmul.f32 %v2922_v37, %v513_v53  ;;  %v1241_v34 = vmul.f32 %v2932_v63, %v562_v8 }
 0x131   :  { %v3191_v5 = vpop.eup %2115  ;;  %v857_v2 = vsel %vm3098_vm10, %v3091_v10, %v852_v32  ;;  %2119 = vrcp.f32 %v3133_v26  ;;  %v3197_v19 = vadd.f32 1.0, %v2106_v25  ;;  %v3207_v37 = vadd.f32 1.0, %v2108_v24 }
 0x132   :  { %v3209_v63 = vpop.eup %2117  ;;  %v867_v10 = vsel %vm3170_vm4, %v3043_v6, %v863_v48  ;;  %v886_v28 = vor.u32 1.1754944e-38, %v885_v12  ;;  %v1270_v32 = vpack.c.bf16 %v1242_v29, %v1240_v46  ;;  %v1271_v25 = vpack.c.bf16 %v1243_v4, %v1241_v34 }
 0x133   :  { %v882_v53 = vsel %vm3183_vm6, %v3063_v40, %v878_v21  ;;  %vm884_vm5 = vcmp.eq.f32.partialorder %v883_v15, 8.507059e+37  ;;  %v901_v38 = vor.u32 1.1754944e-38, %v900_v0  ;;  %v3219_v8 = vadd.f32 %v2542_v3, %v2378_v54  ;;  %v3796_v0 = vld [vmem:[#allocation26_spill] sm:$0xff] }
 0x134   :  { %v897_v24 = vsel %vm3203_vm3, %v3074_v33, %v893_v1  ;;  %vm3224_vm7 = vcmp.eq.f32.partialorder %v898_v45, 8.507059e+37  ;;  %v3228_v6 = vadd.f32 1.0, %v2110_v60  ;;  %v905_v34 = vmul.f32 %v3164_v22, %v3093_v23  ;;  %v3797_v1 = vld [vmem:[#allocation27_spill] sm:$0xff] }
 0x135   :  { %v872_v40 = vsel %vm3129_vm13, %v871_v35, %v867_v10  ;;  %v920_v3 = vmul.f32 %v3177_v27, %v3103_v31  ;;  %v935_v48 = vmul.f32 %v3191_v5, %v3110_v41  ;;  %v950_v33 = vmul.f32 %v3209_v63, %v3123_v49  ;;  %v3249_v29 = vpop.f32.mrf.mxu2 }
 0x136   :  { %v3242_v12 = vadd.f32 %v3006_v13, %v3096_v17  ;;  %v3246_v60 = vadd.f32 %v3023_v9, %v3113_v30  ;;  %2121 = vrcp.f32 %v3197_v19  ;;  %v887_v59 = vsel %vm884_vm5, %v886_v28, %v882_v53  ;;  %1441 = vmatmul.bf16.gmra.mxu0 %v1270_v32  ;;  %1490 = vmatmul.bf16.gmra.mxu1 %v1271_v25  ;;  %v3251_v4 = vpop.f32.mrf.mxu3  ;;  %v3794_v30 = vld [vmem:[#allocation19_spill] sm:$0xff] }
 0x137   :  { %v3253_v35 = vpop.eup %2119  ;;  %v902_v21 = vsel %vm3224_vm7, %v901_v38, %v897_v24  ;;  %2123 = vrcp.f32 %v3207_v37  ;;  %v1818_v17 = vmul.f32 -1.442695, %v3219_v8  ;;  %v3261_v15 = vadd.f32 %v3794_v30, %v2380_v55 }
 0x138   :  { %v1212_v61 = vmul.f32 %v857_v2, %v3796_v0  ;;  %v1213_v45 = vmul.f32 %v872_v40, %v3797_v1  ;;  %2125 = vrcp.f32 %v3228_v6  ;;  %v906_v46 = vsub.f32 1.0, %v905_v34 }
 0x139   :  { %3795 = vst [vmem:[#allocation19_spill] sm:$0xff] %v3261_v15  ;;  %v1214_v50 = vmul.f32 %v887_v59, %v2815_v47  ;;  %v921_v10 = vsub.f32 1.0, %v920_v3  ;;  %v936_v28 = vsub.f32 1.0, %v935_v48  ;;  %v951_v32 = vsub.f32 1.0, %v950_v33  ;;  %v3798_v33 = vld [vmem:[#allocation20_spill] sm:$0xff] }
 0x13a   :  { %v1215_v25 = vmul.f32 %v902_v21, %v2825_v20  ;;  %vm909_vm8 = vweird.f32 %v3093_v23  ;;  %v520_v53 = vadd.f32 %v3105_v51, %v3019_v7  ;;  %v569_v2 = vadd.f32 %v3107_v42, %v3021_v62 }
 0x13b   :  { %v913_v38 = vand.u32 2147483647, %v3093_v23  ;;  %v915_v24 = vand.u32 2147483648, %v3093_v23  ;;  %2127 = vpow2.f32 %v1818_v17  ;;  %v1819_v47 = vmul.f32 -1.442695, %v3261_v15  ;;  %v3818_v15 = vld [vmem:[#allocation23_spill] sm:$0xff] }
 0x13c   :  { %v3276_v58 = vpop.eup %2121  ;;  %v907_v34 = vmul.f32 %v3164_v22, %v906_v46  ;;  %vm910_vm9 = vweird.f32 %v3164_v22  ;;  %v518_v20 = vadd.f32 %v3053_v36, %v3019_v7  ;;  %v567_v51 = vadd.f32 %v3055_v43, %v3021_v62 }
 0x13d   :  { %v3284_v42 = vpop.eup %2123  ;;  %v922_v40 = vmul.f32 %v3177_v27, %v921_v10  ;;  %v937_v3 = vmul.f32 %v3191_v5, %v936_v28  ;;  %v952_v48 = vmul.f32 %v3209_v63, %v951_v32  ;;  %v3291_v59 = vadd.f32 %v3798_v33, %v2378_v54  ;;  %v527_v17 = vpop.f32.mrf.mxu2  ;;  %vm3346_vm7 = vmor %vm909_vm8, %vm910_vm9 }
 0x13e   :  { %v3293_v21 = vpop.eup %2125  ;;  %vm1060_vm10 = vweird.f32 %v3006_v13  ;;  %vm939_vm11 = vweird.f32 %v3110_v41  ;;  %vm940_vm12 = vweird.f32 %v3191_v5  ;;  %v1246_v36 = vmul.f32 %v1214_v50, %v520_v53  ;;  %v576_v30 = vpop.f32.mrf.mxu3 }
 0x13f   :  { %v1247_v43 = vmul.f32 %v1215_v25, %v569_v2  ;;  %v943_v0 = vand.u32 2147483647, %v3110_v41  ;;  %v945_v1 = vand.u32 2147483648, %v3110_v41  ;;  %vm954_vm13 = vweird.f32 %v3123_v49  ;;  %vm3319_vm4 = vmor %vm939_vm11, %vm940_vm12 }
 0x140   :  { %vm955_vm14 = vweird.f32 %v3209_v63  ;;  %vm1059_vm15 = vweird.f32 %v2916_v14  ;;  %vm3303_vm0 = vcmp.eq.f32.partialorder %v913_v38, 8.507059e+37  ;;  %v958_v46 = vand.u32 2147483647, %v3123_v49  ;;  %v3805_v38 = vld [vmem:[#allocation21_spill] sm:$0xff] }
 0x141   :  { %v960_v50 = vand.u32 2147483648, %v3123_v49  ;;  %v1244_v10 = vmul.f32 %v1212_v61, %v518_v20  ;;  %v1245_v28 = vmul.f32 %v1213_v45, %v567_v51  ;;  %v3309_v32 = vpop.eup %2127  ;;  %vm1075_vm1 = vweird.f32 %v3023_v9  ;;  %vm3329_vm3 = vmor %vm954_vm13, %vm955_vm14  ;;  %v3820_v45 = vld [vmem:[#allocation28_spill] sm:$0xff] }
 0x142   :  { %vm924_vm2 = vweird.f32 %v3103_v31  ;;  %v928_v25 = vand.u32 2147483647, %v3103_v31  ;;  %v938_v53 = vadd.f32 %v3191_v5, %v937_v3  ;;  %v953_v61 = vadd.f32 %v3209_v63, %v952_v48  ;;  %vm3395_vm9 = vmor %vm1059_vm15, %vm1060_vm10 }
 0x143   :  { %vm925_vm6 = vweird.f32 %v3177_v27  ;;  %v3335_v20 = vadd.f32 %v3805_v38, %v2380_v55  ;;  %v1272_v41 = vpack.c.bf16 %v1246_v36, %v1244_v10  ;;  %v1273_v51 = vpack.c.bf16 %v1247_v43, %v1245_v28 }
 0x144   :  { %vm1074_vm5 = vweird.f32 %v2936_v52  ;;  %v908_v3 = vadd.f32 %v3164_v22, %v907_v34  ;;  %v923_v48 = vadd.f32 %v3177_v27, %v922_v40  ;;  %v930_v33 = vand.u32 2147483648, %v3103_v31  ;;  %vm3362_vm13 = vmor %vm924_vm2, %vm925_vm6 }
 0x145   :  { %v1820_v49 = vmul.f32 -1.442695, %v3291_v59  ;;  %vm3350_vm11 = vcmp.eq.f32.partialorder %v943_v0, 8.507059e+37  ;;  %v946_v36 = vor.u32 1.1754944e-38, %v945_v1  ;;  %vm3354_vm12 = vcmp.eq.f32.partialorder %v958_v46, 8.507059e+37  ;;  %v529_v28 = vpop.f32.mrf.mxu2  ;;  %vm3431_vm10 = vmor %vm1074_vm5, %vm1075_vm1 }
 0x146   :  { %v961_v40 = vor.u32 1.1754944e-38, %v960_v50  ;;  %v942_v43 = vsel %vm3319_vm4, %v3191_v5, %v938_v53  ;;  %v957_v0 = vsel %vm3329_vm3, %v3209_v63, %v953_v61  ;;  %v528_v1 = vadd.f32 %v527_v17, %v3019_v7  ;;  %1446 = vmatmul.bf16.gmra.mxu0 %v1272_v41  ;;  %1495 = vmatmul.bf16.gmra.mxu1 %v1273_v51  ;;  %v578_v5 = vpop.f32.mrf.mxu3  ;;  %v3819_v61 = vld [vmem:[#allocation25_spill] sm:$0xff] }
 0x147   :  { %v577_v46 = vadd.f32 %v576_v30, %v3021_v62  ;;  %v916_v50 = vor.u32 1.1754944e-38, %v915_v24  ;;  %vm3374_vm8 = vcmp.eq.f32.partialorder %v928_v25, 8.507059e+37  ;;  %2129 = vpow2.f32 %v1819_v47 }
 0x148   :  { %v1821_v31 = vmul.f32 -1.442695, %v3335_v20  ;;  %v912_v63 = vsel %vm3346_vm7, %v3164_v22, %v908_v3  ;;  %v931_v53 = vor.u32 1.1754944e-38, %v930_v33  ;;  %v530_v17 = vadd.f32 %v529_v28, %v3019_v7 }
 0x149   :  { %v579_v24 = vadd.f32 %v578_v5, %v3021_v62  ;;  %v927_v30 = vsel %vm3362_vm13, %v3177_v27, %v923_v48  ;;  %v947_v47 = vsel %vm3350_vm11, %v946_v36, %v942_v43  ;;  %v962_v25 = vsel %vm3354_vm12, %v961_v40, %v957_v0 }
 0x14a   :  { %2131 = vpow2.f32 %v1820_v49  ;;  %v3400_v2 = vmul.f32 %v3818_v15, %v528_v1  ;;  %v3403_v27 = vmul.f32 %v3819_v61, %v577_v46  ;;  %v3406_v38 = vmul.f32 %v3820_v45, %v530_v17  ;;  %v3827_v45 = vld [vmem:[#allocation17_spill] sm:$0xff] }
 0x14b   :  { %v3409_v41 = vmul.f32 %v2880_v18, %v579_v24  ;;  %v1062_v51 = vsel %vm3395_vm9, %v3006_v13, %v3242_v12  ;;  %2133 = vpow2.f32 %v1821_v31  ;;  %v525_v3 = vadd.f32 %v3249_v29, %v3019_v7 }
 0x14c   :  { %v574_v48 = vadd.f32 %v3251_v4, %v3021_v62  ;;  %v917_v33 = vsel %vm3303_vm0, %v916_v50, %v912_v63  ;;  %v932_v49 = vsel %vm3374_vm8, %v931_v53, %v927_v30  ;;  %v1276_v18 = vpack.c.bf16 %v3406_v38, %v3400_v2 }
 0x14d   :  { %v1277_v55 = vpack.c.bf16 %v3409_v41, %v3403_v27  ;;  %v2130_v13 = vpop.eup %2129  ;;  %v1218_v29 = vmul.f32 %v947_v47, %v2976_v57  ;;  %v1219_v4 = vmul.f32 %v962_v25, %v2997_v56  ;;  %v523_v54 = vadd.f32 %v3160_v44, %v3019_v7  ;;  %v532_v1 = vpop.f32.mrf.mxu2 }
 0x14e   :  { %v572_v36 = vadd.f32 %v3162_v16, %v3021_v62  ;;  %v1077_v34 = vsel %vm3431_vm10, %v3023_v9, %v3246_v60  ;;  %v1085_v40 = vmul.f32 %v3253_v35, %v3133_v26  ;;  %v1100_v23 = vmul.f32 %v3276_v58, %v3197_v19  ;;  %v581_v46 = vpop.f32.mrf.mxu3 }
 0x14f   :  { %v1115_v57 = vmul.f32 %v3284_v42, %v3207_v37  ;;  %v1216_v44 = vmul.f32 %v917_v33, %v2939_v39  ;;  %v1217_v43 = vmul.f32 %v932_v49, %v2968_v11  ;;  %v1250_v16 = vmul.f32 %v1218_v29, %v525_v3  ;;  %v3826_v39 = vld [vmem:[#allocation31_spill] sm:$0xff]  ;;  %v3831_v49 = vld [vmem:[#allocation22_spill] sm:$0xff] }
 0x150   :  { %v2132_v56 = vpop.eup %2131  ;;  %v1251_v0 = vmul.f32 %v1219_v4, %v574_v48  ;;  %v3823_v9 = vand.u32 2147483647, %v2916_v14  ;;  %v3824_v60 = vand.u32 2147483647, %v2936_v52  ;;  %v3825_v50 = vand.u32 2147483648, %v2936_v52  ;;  %v3830_v48 = vld [vmem:[#allocation30_spill] sm:$0xff] }
 0x151   :  { %v1130_v31 = vmul.f32 %v3293_v21, %v3228_v6  ;;  %v2134_v28 = vpop.eup %2133  ;;  %v3463_v11 = vadd.f32 1.0, %v3309_v32  ;;  %v1248_v63 = vmul.f32 %v1216_v44, %v523_v54  ;;  %v1249_v53 = vmul.f32 %v1217_v43, %v572_v36  ;;  %v3829_v32 = vld [vmem:[#allocation18_spill] sm:$0xff] }
 0x152   :  { %vm1064_vm14 = vcmp.eq.f32.partialorder %v3823_v9, 8.507059e+37  ;;  %vm1079_vm15 = vcmp.eq.f32.partialorder %v3824_v60, 8.507059e+37  ;;  %v1081_v10 = vor.u32 1.1754944e-38, %v3825_v50  ;;  %v1086_v14 = vsub.f32 1.0, %v1085_v40 }
 0x153   :  { %v1067_v5 = vsel %vm1064_vm14, %v3826_v39, %v1062_v51  ;;  %v1101_v24 = vsub.f32 1.0, %v1100_v23  ;;  %v3465_v30 = vadd.f32 1.0, %v2130_v13  ;;  %v1116_v47 = vsub.f32 1.0, %v1115_v57  ;;  %v3828_v51 = vld [vmem:[#allocation29_spill] sm:$0xff]  ;;  %v3832_v13 = vld [vmem:[#allocation24_spill] sm:$0xff] }
 0x154   :  { %v1082_v17 = vsel %vm1079_vm15, %v1081_v10, %v1077_v34  ;;  %v3467_v25 = vadd.f32 1.0, %v2132_v56  ;;  %v1274_v52 = vpack.c.bf16 %v1250_v16, %v1248_v63  ;;  %v1275_v22 = vpack.c.bf16 %v1251_v0, %v1249_v53 }
 0x155   :  { %v1131_v15 = vsub.f32 1.0, %v1130_v31  ;;  %v3469_v61 = vadd.f32 1.0, %v2134_v28  ;;  %v1224_v3 = vmul.f32 %v3828_v51, %v3827_v45  ;;  %v1225_v33 = vmul.f32 %v3830_v48, %v3829_v32  ;;  %v534_v23 = vpop.f32.mrf.mxu2 }
 0x156   :  { %v1226_v12 = vmul.f32 %v1067_v5, %v3831_v49  ;;  %2135 = vrcp.f32 %v3463_v11  ;;  %v1227_v29 = vmul.f32 %v1082_v17, %v3832_v13  ;;  %v533_v4 = vadd.f32 %v532_v1, %v3019_v7  ;;  %1451 = vmatmul.bf16.gmra.mxu0 %v1274_v52  ;;  %1500 = vmatmul.bf16.gmra.mxu1 %v1275_v22  ;;  %v583_v57 = vpop.f32.mrf.mxu3  ;;  %v3844_v22 = vld [vmem:[#allocation35_spill] sm:$0xff] }
 0x157   :  { %2137 = vrcp.f32 %v3465_v30  ;;  %v582_v54 = vadd.f32 %v581_v46, %v3021_v62  ;;  %v1087_v36 = vmul.f32 %v3253_v35, %v1086_v14  ;;  %v1102_v34 = vmul.f32 %v3276_v58, %v1101_v24  ;;  %v3843_v24 = vld [vmem:[#allocation34_spill] sm:$0xff] }
 0x158   :  { %v1117_v40 = vmul.f32 %v3284_v42, %v1116_v47  ;;  %2139 = vrcp.f32 %v3467_v25  ;;  %v1132_v56 = vmul.f32 %v3293_v21, %v1131_v15  ;;  %v535_v44 = vadd.f32 %v534_v23, %v3019_v7 }
 0x159   :  { %2141 = vrcp.f32 %v3469_v61  ;;  %v584_v43 = vadd.f32 %v583_v57, %v3021_v62  ;;  %vm1089_vm0 = vweird.f32 %v3133_v26  ;;  %vm1090_vm1 = vweird.f32 %v3253_v35 }
 0x15a   :  { %vm1104_vm2 = vweird.f32 %v3197_v19  ;;  %vm1105_vm4 = vweird.f32 %v3276_v58  ;;  %v3493_v16 = vmul.f32 %v1224_v3, %v533_v4  ;;  %v3495_v0 = vmul.f32 %v1225_v33, %v582_v54  ;;  %vm3509_vm5 = vmor %vm1089_vm0, %vm1090_vm1 }
 0x15b   :  { %v3497_v1 = vmul.f32 %v1226_v12, %v535_v44  ;;  %v3499_v46 = vmul.f32 %v1227_v29, %v584_v43  ;;  %v1088_v60 = vadd.f32 %v3253_v35, %v1087_v36  ;;  %v1103_v50 = vadd.f32 %v3276_v58, %v1102_v34  ;;  %vm3527_vm7 = vmor %vm1104_vm2, %vm1105_vm4 }
 0x15c   :  { %v3501_v9 = vpop.eup %2135  ;;  %vm1120_vm6 = vweird.f32 %v3284_v42  ;;  %vm1135_vm3 = vweird.f32 %v3293_v21  ;;  %v1118_v28 = vadd.f32 %v3284_v42, %v1117_v40  ;;  %v1133_v39 = vadd.f32 %v3293_v21, %v1132_v56 }
 0x15d   :  { %v3507_v10 = vpop.eup %2137  ;;  %v1278_v5 = vpack.c.bf16 %v3497_v1, %v3493_v16  ;;  %v1279_v63 = vpack.c.bf16 %v3499_v46, %v3495_v0  ;;  %v1093_v17 = vand.u32 2147483647, %v3133_v26  ;;  %v1095_v14 = vand.u32 2147483648, %v3133_v26  ;;  %v537_v48 = vpop.f32.mrf.mxu2 }
 0x15e   :  { %v3519_v53 = vpop.eup %2139  ;;  %vm1119_vm11 = vweird.f32 %v3207_v37  ;;  %v1110_v52 = vand.u32 2147483648, %v3197_v19  ;;  %v1125_v26 = vand.u32 2147483648, %v3207_v37  ;;  %vm1134_vm13 = vweird.f32 %v3228_v6  ;;  %v586_v33 = vpop.f32.mrf.mxu3 }
 0x15f   :  { %v3532_v47 = vpop.eup %2141  ;;  %vm3537_vm12 = vmor %vm1119_vm11, %vm1120_vm6  ;;  %v1140_v15 = vand.u32 2147483648, %v3228_v6  ;;  %v1108_v45 = vand.u32 2147483647, %v3197_v19  ;;  %v1123_v51 = vand.u32 2147483647, %v3207_v37  ;;  %v1092_v49 = vsel %vm3509_vm5, %v3253_v35, %v1088_v60 }
 0x160   :  { %vm3548_vm8 = vmor %vm1134_vm13, %vm1135_vm3  ;;  %v1138_v32 = vand.u32 2147483647, %v3228_v6  ;;  %v1107_v19 = vsel %vm3527_vm7, %v3276_v58, %v1103_v50  ;;  %v1122_v37 = vsel %vm3537_vm12, %v3284_v42, %v1118_v28  ;;  %v1145_v6 = vmul.f32 %v3501_v9, %v3463_v11  ;;  %v3841_v50 = vld [vmem:[#allocation32_spill] sm:$0xff]  ;;  %v3842_v28 = vld [vmem:[#allocation33_spill] sm:$0xff] }
 0x161   :  { %v1137_v12 = vsel %vm3548_vm8, %v3293_v21, %v1133_v39  ;;  %v1160_v13 = vmul.f32 %v3507_v10, %v3465_v30  ;;  %v1175_v35 = vmul.f32 %v3519_v53, %v3467_v25  ;;  %v1190_v58 = vmul.f32 %v3532_v47, %v3469_v61 }
 0x162   :  { %v1096_v29 = vor.u32 1.1754944e-38, %v1095_v14  ;;  %v1111_v4 = vor.u32 1.1754944e-38, %v1110_v52  ;;  %v1126_v54 = vor.u32 1.1754944e-38, %v1125_v26  ;;  %v1141_v42 = vor.u32 1.1754944e-38, %v1140_v15 }
 0x163   :  { %vm1094_vm9 = vcmp.eq.f32.partialorder %v1093_v17, 8.507059e+37  ;;  %vm1109_vm10 = vcmp.eq.f32.partialorder %v1108_v45, 8.507059e+37  ;;  %vm1124_vm14 = vcmp.eq.f32.partialorder %v1123_v51, 8.507059e+37  ;;  %vm1139_vm15 = vcmp.eq.f32.partialorder %v1138_v32, 8.507059e+37 }
 0x164   :  { %v1097_v21 = vsel %vm1094_vm9, %v1096_v29, %v1092_v49  ;;  %v1112_v36 = vsel %vm1109_vm10, %v1111_v4, %v1107_v19  ;;  %v1127_v34 = vsel %vm1124_vm14, %v1126_v54, %v1122_v37  ;;  %v1142_v40 = vsel %vm1139_vm15, %v1141_v42, %v1137_v12 }
 0x165   :  { %v1146_v23 = vsub.f32 1.0, %v1145_v6  ;;  %v1161_v57 = vsub.f32 1.0, %v1160_v13  ;;  %v1176_v56 = vsub.f32 1.0, %v1175_v35  ;;  %v1191_v44 = vsub.f32 1.0, %v1190_v58  ;;  %v539_v17 = vpop.f32.mrf.mxu2 }
 0x166   :  { %v538_v43 = vadd.f32 %v537_v48, %v3019_v7  ;;  %v587_v60 = vadd.f32 %v586_v33, %v3021_v62  ;;  %v1228_v31 = vmul.f32 %v1097_v21, %v3841_v50  ;;  %v1229_v39 = vmul.f32 %v1112_v36, %v3842_v28  ;;  %1456 = vmatmul.bf16.gmra.mxu0 %v1276_v18  ;;  %v588_v14 = vpop.f32.mrf.mxu3 }
 0x167   :  { %1505 = vmatmul.bf16.gmra.mxu1 %v1277_v55  ;;  %v1230_v52 = vmul.f32 %v1127_v34, %v3843_v24  ;;  %v1231_v26 = vmul.f32 %v1142_v40, %v3844_v22  ;;  %v540_v15 = vadd.f32 %v539_v17, %v3019_v7  ;;  %v589_v45 = vadd.f32 %v588_v14, %v3021_v62 }
 0x168   :  { %v1147_v51 = vmul.f32 %v3501_v9, %v1146_v23  ;;  %v1162_v3 = vmul.f32 %v3507_v10, %v1161_v57  ;;  %v1177_v2 = vmul.f32 %v3519_v53, %v1176_v56  ;;  %v1192_v38 = vmul.f32 %v3532_v47, %v1191_v44 }
 0x169   :  { %v3591_v27 = vmul.f32 %v1228_v31, %v538_v43  ;;  %v3593_v41 = vmul.f32 %v1229_v39, %v587_v60  ;;  %v3595_v18 = vmul.f32 %v1230_v52, %v540_v15  ;;  %v3597_v55 = vmul.f32 %v1231_v26, %v589_v45  ;;  %v3851_v39 = vld [vmem:[#allocation19_spill] sm:$0xff] }
 0x16a   :  { %vm1149_vm0 = vweird.f32 %v3463_v11  ;;  %vm1150_vm1 = vweird.f32 %v3501_v9  ;;  %v1153_v32 = vand.u32 2147483647, %v3463_v11  ;;  %v1155_v48 = vand.u32 2147483648, %v3463_v11 }
 0x16b   :  { %vm1165_vm2 = vweird.f32 %v3507_v10  ;;  %v1280_v33 = vpack.c.bf16 %v3595_v18, %v3591_v27  ;;  %v1281_v49 = vpack.c.bf16 %v3597_v55, %v3593_v41  ;;  %v1148_v19 = vadd.f32 %v3501_v9, %v1147_v51  ;;  %vm3612_vm3 = vmor %vm1149_vm0, %vm1150_vm1 }
 0x16c   :  { %v1163_v37 = vadd.f32 %v3507_v10, %v1162_v3  ;;  %vm1164_vm4 = vweird.f32 %v3465_v30  ;;  %vm1180_vm6 = vweird.f32 %v3519_v53  ;;  %v1170_v11 = vand.u32 2147483648, %v3465_v30 }
 0x16d   :  { %v1178_v6 = vadd.f32 %v3519_v53, %v1177_v2  ;;  %v1193_v13 = vadd.f32 %v3532_v47, %v1192_v38  ;;  %vm1195_vm5 = vweird.f32 %v3532_v47  ;;  %vm3620_vm7 = vmor %vm1164_vm4, %vm1165_vm2  ;;  %v1168_v58 = vand.u32 2147483647, %v3465_v30  ;;  %v542_v54 = vpop.f32.mrf.mxu2 }
 0x16e   :  { %vm1179_vm11 = vweird.f32 %v3467_v25  ;;  %v1185_v29 = vand.u32 2147483648, %v3467_v25  ;;  %v1200_v4 = vand.u32 2147483648, %v3469_v61  ;;  %v591_v42 = vpop.f32.mrf.mxu3  ;;  %v1183_v36 = vand.u32 2147483647, %v3467_v25 }
 0x16f   :  { %vm3628_vm12 = vmor %vm1179_vm11, %vm1180_vm6  ;;  %vm1194_vm13 = vweird.f32 %v3469_v61  ;;  %v1198_v34 = vand.u32 2147483647, %v3469_v61  ;;  %v1152_v30 = vsel %vm3612_vm3, %v3501_v9, %v1148_v19  ;;  %v1167_v40 = vsel %vm3620_vm7, %v3507_v10, %v1163_v37 }
 0x170   :  { %vm1196_vm8 = vmor %vm1194_vm13, %vm1195_vm5  ;;  %v1156_v23 = vor.u32 1.1754944e-38, %v1155_v48  ;;  %v1171_v57 = vor.u32 1.1754944e-38, %v1170_v11  ;;  %v1182_v56 = vsel %vm3628_vm12, %v3519_v53, %v1178_v6  ;;  %vm1154_vm9 = vcmp.eq.f32.partialorder %v1153_v32, 8.507059e+37 }
 0x171   :  { %v1197_v25 = vsel %vm1196_vm8, %v3532_v47, %v1193_v13  ;;  %vm1169_vm10 = vcmp.eq.f32.partialorder %v1168_v58, 8.507059e+37  ;;  %v1186_v61 = vor.u32 1.1754944e-38, %v1185_v29  ;;  %v1201_v44 = vor.u32 1.1754944e-38, %v1200_v4 }
 0x172   :  { %v1157_v43 = vsel %vm1154_vm9, %v1156_v23, %v1152_v30  ;;  %v1172_v60 = vsel %vm1169_vm10, %v1171_v57, %v1167_v40  ;;  %vm1184_vm14 = vcmp.eq.f32.partialorder %v1183_v36, 8.507059e+37  ;;  %vm1199_vm15 = vcmp.eq.f32.partialorder %v1198_v34, 8.507059e+37 }
 0x173   :  { %v1187_v9 = vsel %vm1184_vm14, %v1186_v61, %v1182_v56  ;;  %v1202_v50 = vsel %vm1199_vm15, %v1201_v44, %v1197_v25  ;;  %v543_v10 = vadd.f32 %v542_v54, %v3019_v7  ;;  %v592_v31 = vadd.f32 %v591_v42, %v3021_v62 }
 0x174   :  { %v1232_v28 = vmul.f32 %v1157_v43, %v3219_v8  ;;  %v1233_v53 = vmul.f32 %v1172_v60, %v3851_v39  ;;  %v1234_v14 = vmul.f32 %v1187_v9, %v3291_v59  ;;  %v1235_v24 = vmul.f32 %v1202_v50, %v3335_v20  ;;  %v107_v59 = vld [vmem:[%s3692_s6] sm:$0x1]  ;;  %s2304_s6 = smov [#allocation12]  }
 0x175   :  { %v544_v47 = vpop.f32.mrf.mxu2  ;;  %v108_v46 = vunpack.c.l.bf16 %v107_v59  ;;  %s1613_s28 = sshll.u32 %s2304_s6, 4  ;;  %s1614_s28 = int_to_ptr.vmem [resolvable:$true] %s1613_s28 }
 0x176   :  { %1461 = vmatmul.bf16.gmra.mxu0 %v1278_v5  ;;  %v593_v17 = vpop.f32.mrf.mxu3  ;;  %v545_v52 = vadd.f32 %v544_v47, %v3019_v7  ;;  %v1264_v22 = vmul.f32 %v1232_v28, %v543_v10  ;;  %v1265_v26 = vmul.f32 %v1233_v53, %v592_v31 }
 0x177   :  { %1510 = vmatmul.bf16.gmra.mxu1 %v1279_v63  ;;  %v594_v8 = vadd.f32 %v593_v17, %v3021_v62  ;;  %v3662_v7 = vperm.slane %v108_v46, 0 }
 0x178   :  { %v1266_v15 = vmul.f32 %v1234_v14, %v545_v52 }
 0x179   :  { %v1267_v45 = vmul.f32 %v1235_v24, %v594_v8 }
 0x17a   :  { %v1282_v16 = vpack.c.bf16 %v1266_v15, %v1264_v22 }
 0x17b   :  { %v1283_v1 = vpack.c.bf16 %v1267_v45, %v1265_v26 }
 0x186   :  { %1466 = vmatmul.bf16.gmra.mxu0 %v1280_v33 }
 0x187   :  { %1515 = vmatmul.bf16.gmra.mxu1 %v1281_v49 }
 0x196   :  { %1471 = vmatmul.bf16.gmra.mxu0 %v1282_v16 }
 0x197   :  { %1520 = vmatmul.bf16.gmra.mxu1 %v1283_v1 }
 0x1a3   :  { %v1437_v0 = vpop.f32.mrf.mxu0  ;;  %v1486_v20 = vpop.f32.mrf.mxu1 }
 0x1a4   :  { %v1487_v62 = vadd.f32 %v1486_v20, %v1437_v0 }
 0x1a6   :  { %v1526_v3 = vadd.f32 %v1487_v62, %v3662_v7 }
 0x1ab   :  { %v1439_v5 = vpop.f32.mrf.mxu0  ;;  %v1488_v63 = vpop.f32.mrf.mxu1 }
 0x1ac   :  { %v1489_v51 = vadd.f32 %v1488_v63, %v1439_v5 }
 0x1ae   :  { %v1527_v2 = vadd.f32 %v1489_v51, %v3662_v7 }
 0x1b0   :  { %v1945_v38 = vpack.c.bf16 %v1527_v2, %v1526_v3 }
 0x1b2   :  { %1946 = vst [vmem:[#allocation12] sm:$0xff] %v1945_v38  }
 0x1b3   :  { %v1442_v27 = vpop.f32.mrf.mxu0  ;;  %v1491_v41 = vpop.f32.mrf.mxu1 }
 0x1b4   :  { %v1492_v18 = vadd.f32 %v1491_v41, %v1442_v27 }
 0x1b6   :  { %v1528_v33 = vadd.f32 %v1492_v18, %v3662_v7 }
 0x1bb   :  { %v1444_v55 = vpop.f32.mrf.mxu0  ;;  %v1493_v32 = vpop.f32.mrf.mxu1 }
 0x1bc   :  { %v1494_v48 = vadd.f32 %v1493_v32, %v1444_v55 }
 0x1be   :  { %v1529_v49 = vadd.f32 %v1494_v48, %v3662_v7 }
 0x1c0   :  { %v1950_v19 = vpack.c.bf16 %v1529_v49, %v1528_v33 }
 0x1c2   :  { %1982 = vst [vmem:[#allocation12 + $0x8] sm:$0xff] %v1950_v19  }
 0x1c3   :  { %v1447_v37 = vpop.f32.mrf.mxu0  ;;  %v1496_v12 = vpop.f32.mrf.mxu1 }
 0x1c4   :  { %v1497_v11 = vadd.f32 %v1496_v12, %v1447_v37 }
 0x1c6   :  { %v1530_v58 = vadd.f32 %v1497_v11, %v3662_v7 }
 0x1cb   :  { %v1449_v6 = vpop.f32.mrf.mxu0  ;;  %v1498_v13 = vpop.f32.mrf.mxu1 }
 0x1cc   :  { %v1499_v35 = vadd.f32 %v1498_v13, %v1449_v6 }
 0x1ce   :  { %v1531_v29 = vadd.f32 %v1499_v35, %v3662_v7 }
 0x1d0   :  { %v1955_v4 = vpack.c.bf16 %v1531_v29, %v1530_v58 }
 0x1d2   :  { %1983 = vst [vmem:[#allocation12 + $0x10] sm:$0xff] %v1955_v4  }
 0x1d3   :  { %v1452_v54 = vpop.f32.mrf.mxu0  ;;  %v1501_v42 = vpop.f32.mrf.mxu1 }
 0x1d4   :  { %v1502_v21 = vadd.f32 %v1501_v42, %v1452_v54 }
 0x1d6   :  { %v1532_v40 = vadd.f32 %v1502_v21, %v3662_v7 }
 0x1db   :  { %v1454_v36 = vpop.f32.mrf.mxu0  ;;  %v1503_v34 = vpop.f32.mrf.mxu1 }
 0x1dc   :  { %v1504_v30 = vadd.f32 %v1503_v34, %v1454_v36 }
 0x1de   :  { %v1533_v23 = vadd.f32 %v1504_v30, %v3662_v7 }
 0x1e0   :  { %v1960_v57 = vpack.c.bf16 %v1533_v23, %v1532_v40 }
 0x1e2   :  { %1984 = vst [vmem:[#allocation12 + $0x18] sm:$0xff] %v1960_v57  }
 0x1e3   :  { %v1457_v56 = vpop.f32.mrf.mxu0 }
 0x1e4   :  { %v1506_v25 = vpop.f32.mrf.mxu1 }
 0x1e5   :  { %v1507_v61 = vadd.f32 %v1506_v25, %v1457_v56 }
 0x1e7   :  { %v1534_v9 = vadd.f32 %v1507_v61, %v3662_v7 }
 0x1eb   :  { %v1459_v44 = vpop.f32.mrf.mxu0 }
 0x1ec   :  { %v1508_v43 = vpop.f32.mrf.mxu1 }
 0x1ed   :  { %v1509_v60 = vadd.f32 %v1508_v43, %v1459_v44 }
 0x1ef   :  { %v1535_v50 = vadd.f32 %v1509_v60, %v3662_v7 }
 0x1f1   :  { %v1965_v10 = vpack.c.bf16 %v1535_v50, %v1534_v9 }
 0x1f3   :  { %1985 = vst [vmem:[#allocation12 + $0x20] sm:$0xff] %v1965_v10   ;;  %v1462_v31 = vpop.f32.mrf.mxu0 }
 0x1f4   :  { %v1511_v28 = vpop.f32.mrf.mxu1 }
 0x1f5   :  { %v1512_v39 = vadd.f32 %v1511_v28, %v1462_v31 }
 0x1f7   :  { %v1536_v14 = vadd.f32 %v1512_v39, %v3662_v7 }
 0x1fb   :  { %v1464_v53 = vpop.f32.mrf.mxu0 }
 0x1fc   :  { %v1513_v47 = vpop.f32.mrf.mxu1 }
 0x1fd   :  { %v1514_v17 = vadd.f32 %v1513_v47, %v1464_v53 }
 0x1ff   :  { %v1537_v24 = vadd.f32 %v1514_v17, %v3662_v7 }
 0x201   :  { %v1970_v52 = vpack.c.bf16 %v1537_v24, %v1536_v14 }
 0x203   :  { %1986 = vst [vmem:[#allocation12 + $0x28] sm:$0xff] %v1970_v52   ;;  %v1467_v8 = vpop.f32.mrf.mxu0 }
 0x204   :  { %v1516_v22 = vpop.f32.mrf.mxu1 }
 0x205   :  { %v1517_v26 = vadd.f32 %v1516_v22, %v1467_v8 }
 0x207   :  { %v1538_v1 = vadd.f32 %v1517_v26, %v3662_v7 }
 0x20b   :  { %v1469_v15 = vpop.f32.mrf.mxu0 }
 0x20c   :  { %v1518_v45 = vpop.f32.mrf.mxu1 }
 0x20d   :  { %v1519_v16 = vadd.f32 %v1518_v45, %v1469_v15 }
 0x20f   :  { %v1539_v0 = vadd.f32 %v1519_v16, %v3662_v7 }
 0x211   :  { %v1975_v59 = vpack.c.bf16 %v1539_v0, %v1538_v1 }
 0x213   :  { %1987 = vst [vmem:[#allocation12 + $0x30] sm:$0xff] %v1975_v59   ;;  %v1472_v20 = vpop.f32.mrf.mxu0 }
 0x214   :  { %v1521_v46 = vpop.f32.mrf.mxu1 }
 0x215   :  { %v1522_v62 = vadd.f32 %v1521_v46, %v1472_v20 }
 0x217   :  { %v1540_v3 = vadd.f32 %v1522_v62, %v3662_v7 }
 0x21b   :  { %v1474_v5 = vpop.f32.mrf.mxu0 }
 0x21c   :  { %v1523_v63 = vpop.f32.mrf.mxu1 }
 0x21d   :  { %v1524_v51 = vadd.f32 %v1523_v63, %v1474_v5 }
 0x21f   :  { %v1541_v2 = vadd.f32 %v1524_v51, %v3662_v7 }
 0x221   :  { %v1980_v38 = vpack.c.bf16 %v1541_v2, %v1540_v3 }
 0x223   :  { %1988 = vst [vmem:[#allocation12 + $0x38] sm:$0xff] %v1980_v38  }
 0x224   :  { %1621 = dma.vmem_to_hbm [thread:$0]  %s1614_s28, 1024, %s1616_s8, [#allocation5], %s2300_s19, %s2300_s19, %s2301_s20  }
 0x225   :  { %2293 = dma.done.wait [#allocation5], 1024  }
 0x226   :  { %2294 = vsyncadd [#allocation5], 4294966272 }
 0x227   :  { %1626 = vsyncpa [#allocation4], 1 }
 0x228   :  { %1627 = vsyncpa [#allocation7], 1 }
 0x229   :  { %1628 = vsyncpa [#allocation10], 1 }
 0x22a   :  { %1629 = vsyncpa [#allocation5], 1 }

</bundles_post_ra>
